<compile_context>
chip_gen: v5e
topology: v5e:2x2
jax: 0.10.0
libtpu: 0.0.40
codegen_flags: <defaults>
</compile_context>

<pallas_src>
import functools

import jax
import jax.numpy as jnp
import numpy as np
from jax.experimental import pallas as pl
from jax.experimental.pallas import tpu as pltpu

EPS = 1e-5
LANE = 128        # channel padding target (TPU lane width)
ROW_BLOCK = 8     # output rows per grid step (must divide H)


def _round_up(x, m):
    return ((x + m - 1) // m) * m


# -----------------------------------------------------------------------------
# Pass 1: conv3x3 (pad=1) as 9 accumulating matmuls + per-tile BN stat partials
# -----------------------------------------------------------------------------
def _conv_stats_kernel(xm_ref, xh_ref, w_ref, o_ref, stat_ref):
    # xm_ref  : (1, TH,  W+2, Cin_p)  rows [i*TH, i*TH+TH) of the zero-padded input
    # xh_ref  : (1, 2,   W+2, Cin_p)  the 2 halo rows below the main block
    # w_ref   : (9, Cin_p, TCo)       per-tap weight matrices (tap = 3*dy + dx)
    # o_ref   : (1, TH, W, TCo)       conv output tile (pre-BN)
    # stat_ref: (1, 1, 2, TCo)        per-tile [sum, sum_of_squares] partials (f32)
    TH = xm_ref.shape[1]
    W = o_ref.shape[2]
    TCo = o_ref.shape[3]
    Cin_p = xm_ref.shape[3]
    M = TH * W

    # Assemble the halo'd (TH+2)-row tile: one cheap leading-dim copy; all DMA
    # stays rectangular and auto double-buffered by the BlockSpec pipeline.
    xt = jnp.concatenate([xm_ref[0], xh_ref[0]], axis=0)        # (TH+2, W+2, Cin_p)

    acc = jnp.zeros((M, TCo), jnp.float32)
    for dx in range(3):
        # One column-shifted slab per dx (3 gathers total, not a 9x im2col).
        xs = xt[:, dx:dx + W, :].reshape((TH + 2) * W, Cin_p)
        for dy in range(3):
            lhs = xs[dy * W:dy * W + M]                          # 8-aligned row window
            acc = acc + jnp.dot(lhs, w_ref[3 * dy + dx],
                                preferred_element_type=jnp.float32)

    o_ref[0] = acc.reshape(TH, W, TCo).astype(o_ref.dtype)

    # BatchNorm partial statistics for this tile (kept in f32).
    s = jnp.sum(acc, axis=0, keepdims=True)                      # (1, TCo)
    ss = jnp.sum(acc * acc, axis=0, keepdims=True)               # (1, TCo)
    stat_ref[0, 0] = jnp.concatenate([s, ss], axis=0)            # (2, TCo)


# -----------------------------------------------------------------------------
# Pass 2: y * scale + shift, ReLU  (BN mean/var/affine folded into scale/shift)
# -----------------------------------------------------------------------------
def _bn_relu_kernel(y_ref, scale_ref, shift_ref, o_ref):
    y = y_ref[...].astype(jnp.float32)                           # (1, TH, W, TCo)
    sc = scale_ref[...].reshape(1, 1, 1, -1)
    sh = shift_ref[...].reshape(1, 1, 1, -1)
    o_ref[...] = jnp.maximum(y * sc + sh, 0.0).astype(o_ref.dtype)


def conv_bn_relu_stage(x_nhwc, w_oihw, gamma, beta, *, compute_dtype, out_dtype):
    """One (Conv3x3 pad=1 => BN(train stats) => ReLU) stage.

    x_nhwc: (N, H, W, Cin_p), Cin_p a multiple of 128 (padded channels are zero).
    Returns (N, H, W, Cout_p), Cout_p a multiple of 128 (padded channels are zero).
    """
    N, H, W, Cin_p = x_nhwc.shape
    Cout, Cin = w_oihw.shape[0], w_oihw.shape[1]
    Cout_p = _round_up(Cout, LANE)
    assert Cin <= Cin_p and Cin_p % LANE == 0
    assert W % 8 == 0 and H % ROW_BLOCK == 0, "expects UNet-style H,W multiples of 8"
    TH = ROW_BLOCK
    nHB = H // TH
    nCB = Cout_p // LANE

    # Weights: OIHW -> (ky, kx, ci, co) -> zero-pad channels -> (9, Cin_p, Cout_p).
    w = jnp.transpose(w_oihw, (2, 3, 1, 0))
    w = jnp.pad(w, ((0, 0), (0, 0), (0, Cin_p - Cin), (0, Cout_p - Cout)))
    w = w.reshape(9, Cin_p, Cout_p).astype(compute_dtype)

    # TODO(synk): fold the 1-pixel spatial zero-pad into the kernel (masked halo
    # DMA) to save one HBM round trip of the activations per stage.
    xp = jnp.pad(x_nhwc, ((0, 0), (1, 1), (1, 1), (0, 0))).astype(compute_dtype)

    itemsize = jnp.dtype(compute_dtype).itemsize
    cost1 = pl.CostEstimate(
        flops=2 * N * H * W * 9 * Cin_p * Cout_p,
        transcendentals=0,
        bytes_accessed=(xp.size * itemsize + w.size * itemsize
                        + N * H * W * Cout_p * itemsize
                        + N * nHB * 2 * Cout_p * 4))

    cparams = pltpu.CompilerParams(
        dimension_semantics=("parallel", "parallel", "parallel"),
        vmem_limit_bytes=32 * 1024 * 1024)

    y, stats = pl.pallas_call(
        _conv_stats_kernel,
        grid=(N, nHB, nCB),
        in_specs=[
            # main rows of the padded input
            pl.BlockSpec((1, TH, W + 2, Cin_p), lambda n, i, c: (n, i, 0, 0)),
            # 2 halo rows below the main block (same array, second spec)
            pl.BlockSpec((1, 2, W + 2, Cin_p),
                         lambda n, i, c: (n, (i + 1) * (TH // 2), 0, 0)),
            # per-tap weight matrices, tiled over Cout
            pl.BlockSpec((9, Cin_p, LANE), lambda n, i, c: (0, 0, c)),
        ],
        out_specs=[
            pl.BlockSpec((1, TH, W, LANE), lambda n, i, c: (n, i, 0, c)),
            pl.BlockSpec((1, 1, 2, LANE), lambda n, i, c: (n, i, 0, c)),
        ],
        out_shape=[
            jax.ShapeDtypeStruct((N, H, W, Cout_p), compute_dtype),
            jax.ShapeDtypeStruct((N, nHB, 2, Cout_p), jnp.float32),
        ],
        compiler_params=cparams,
        cost_estimate=cost1,
    )(xp, xp, w)

    # Tiny reduction of per-tile partials -> training-mode batch statistics
    # (biased variance, matching nn.BatchNorm2d defaults), folded into scale/shift.
    cnt = jnp.float32(N * H * W)
    mean = jnp.sum(stats[:, :, 0, :], axis=(0, 1)) / cnt
    var = jnp.maximum(jnp.sum(stats[:, :, 1, :], axis=(0, 1)) / cnt - mean * mean, 0.0)
    gamma_p = jnp.pad(gamma.astype(jnp.float32), (0, Cout_p - Cout))
    beta_p = jnp.pad(beta.astype(jnp.float32), (0, Cout_p - Cout))
    scale = gamma_p * jax.lax.rsqrt(var + EPS)
    shift = beta_p - mean * scale

    out = pl.pallas_call(
        _bn_relu_kernel,
        grid=(N, nHB, nCB),
        in_specs=[
            pl.BlockSpec((1, TH, W, LANE), lambda n, i, c: (n, i, 0, c)),
            pl.BlockSpec((1, LANE), lambda n, i, c: (0, c)),
            pl.BlockSpec((1, LANE), lambda n, i, c: (0, c)),
        ],
        out_specs=pl.BlockSpec((1, TH, W, LANE), lambda n, i, c: (n, i, 0, c)),
        out_shape=jax.ShapeDtypeStruct((N, H, W, Cout_p), out_dtype),
        compiler_params=cparams,
    )(y, scale.reshape(1, Cout_p), shift.reshape(1, Cout_p))
    return out


def double_conv_pallas(x_nchw, params, *, compute_dtype=jnp.float32):
    """Forward pass of double_conv. Input/output in NCHW like PyTorch."""
    out_ch = params["w1"].shape[0]
    N, Cin, H, W = x_nchw.shape
    Cin_p = _round_up(Cin, LANE)

    x = jnp.transpose(x_nchw, (0, 2, 3, 1))                        # NCHW -> NHWC
    x = jnp.pad(x, ((0, 0), (0, 0), (0, 0), (0, Cin_p - Cin)))     # lane-pad channels

    # Conv biases (b1/b2) are intentionally unused: training-mode BatchNorm's mean
    # subtraction cancels a per-channel bias exactly.
    x = conv_bn_relu_stage(x, params["w1"], params["g1"], params["beta1"],
                           compute_dtype=compute_dtype, out_dtype=compute_dtype)
    x = conv_bn_relu_stage(x, params["w2"], params["g2"], params["beta2"],
                           compute_dtype=compute_dtype, out_dtype=jnp.float32)
    x = x[..., :out_ch]
    return jnp.transpose(x, (0, 3, 1, 2))                          # NHWC -> NCHW


def double_conv_reference(x_nchw, params):
    """Pure-JAX reference (lax.conv, with conv bias) for validation."""
    def stage(x, w, b, g, beta):
        y = jax.lax.conv_general_dilated(
            x, w, window_strides=(1, 1), padding=((1, 1), (1, 1)),
            dimension_numbers=("NCHW", "OIHW", "NCHW"))
        y = y + b[None, :, None, None]
        mean = jnp.mean(y, axis=(0, 2, 3), keepdims=True)
        var = jnp.mean((y - mean) ** 2, axis=(0, 2, 3), keepdims=True)
        y = (y - mean) * jax.lax.rsqrt(var + EPS)
        y = y * g[None, :, None, None] + beta[None, :, None, None]
        return jnp.maximum(y, 0.0)

    x = stage(x_nchw, params["w1"], params["b1"], params["g1"], params["beta1"])
    x = stage(x, params["w2"], params["b2"], params["g2"], params["beta2"])
    return x


def init_params(key, in_ch, out_ch):
    ks = jax.random.split(key, 8)
    return {
        "w1": 0.1 * jax.random.normal(ks[0], (out_ch, in_ch, 3, 3), jnp.float32),
        "b1": 0.1 * jax.random.normal(ks[1], (out_ch,), jnp.float32),
        "g1": 1.0 + 0.1 * jax.random.normal(ks[2], (out_ch,), jnp.float32),
        "beta1": 0.1 * jax.random.normal(ks[3], (out_ch,), jnp.float32),
        "w2": 0.1 * jax.random.normal(ks[4], (out_ch, out_ch, 3, 3), jnp.float32),
        "b2": 0.1 * jax.random.normal(ks[5], (out_ch,), jnp.float32),
        "g2": 1.0 + 0.1 * jax.random.normal(ks[6], (out_ch,), jnp.float32),
        "beta2": 0.1 * jax.random.normal(ks[7], (out_ch,), jnp.float32),
    }


if __name__ == "__main__":
    key = jax.random.PRNGKey(0)
    k_x, k_p = jax.random.split(key)

    in_ch, out_ch = 4, 8
    x = jax.random.normal(k_x, (2, in_ch, 16, 16), jnp.float32)    # NCHW like PyTorch
    params = init_params(k_p, in_ch, out_ch)

    ref = jax.block_until_ready(double_conv_reference(x, params))

    # f32 path: strict correctness check.
    fwd_f32 = jax.jit(functools.partial(double_conv_pallas, params=params,
                                        compute_dtype=jnp.float32))
    out_f32 = jax.block_until_ready(fwd_f32(x))
    np.testing.assert_allclose(np.asarray(out_f32), np.asarray(ref),
                               rtol=1e-4, atol=1e-4)

    # bf16 MXU-operand path (v6e/v7x fast path); stats/BN math stay f32.
    fwd_bf16 = jax.jit(functools.partial(double_conv_pallas, params=params,
                                         compute_dtype=jnp.bfloat16))
    out_bf16 = jax.block_until_ready(fwd_bf16(x))
    np.testing.assert_allclose(np.asarray(out_bf16), np.asarray(ref),
                               rtol=1e-1, atol=1e-1)

    print("KERNEL_OK")
</pallas_src>

<mosaic_0001>
module attributes {stable_mosaic.version = 11 : i64} {
  func.func @_conv_stats_kernel(%arg0: i32, %arg1: i32, %arg2: i32, %arg3: memref<1x8x18x128xf32, #tpu.memory_space<vmem>>, %arg4: memref<1x2x18x128xf32, #tpu.memory_space<vmem>>, %arg5: memref<9x128x128xf32, #tpu.memory_space<vmem>>, %arg6: memref<1x8x16x128xf32, #tpu.memory_space<vmem>>, %arg7: memref<1x1x2x128xf32, #tpu.memory_space<vmem>>) attributes {dimension_semantics = [#tpu.dimension_semantics<parallel>, #tpu.dimension_semantics<parallel>, #tpu.dimension_semantics<parallel>], iteration_bounds = array<i64: 2, 2, 1>, scalar_prefetch = 0 : i64, scratch_operands = 0 : i64, tpu.core_type = #tpu.core_type<tc>, window_params = [{transform_indices = @transform_0, window_bounds = array<i64: 1, 8, 18, 128>}, {transform_indices = @transform_1, window_bounds = array<i64: 1, 2, 18, 128>}, {transform_indices = @transform_2, window_bounds = array<i64: 9, 128, 128>}, {transform_indices = @transform_3, window_bounds = array<i64: 1, 8, 16, 128>}, {transform_indices = @transform_4, window_bounds = array<i64: 1, 1, 2, 128>}]} {
    %c0 = arith.constant 0 : index
    %c0_0 = arith.constant 0 : index
    %c0_1 = arith.constant 0 : index
    %c0_2 = arith.constant 0 : index
    %0 = vector.load %arg3[%c0, %c0_0, %c0_1, %c0_2] : memref<1x8x18x128xf32, #tpu.memory_space<vmem>>, vector<1x8x18x128xf32>
    %1 = vector.shape_cast %0 : vector<1x8x18x128xf32> to vector<8x18x128xf32>
    %c0_3 = arith.constant 0 : index
    %c0_4 = arith.constant 0 : index
    %c0_5 = arith.constant 0 : index
    %c0_6 = arith.constant 0 : index
    %2 = vector.load %arg4[%c0_3, %c0_4, %c0_5, %c0_6] : memref<1x2x18x128xf32, #tpu.memory_space<vmem>>, vector<1x2x18x128xf32>
    %3 = vector.shape_cast %2 : vector<1x2x18x128xf32> to vector<2x18x128xf32>
    %4 = tpu.concatenate %1, %3 in 0 : vector<8x18x128xf32>, vector<2x18x128xf32> -> vector<10x18x128xf32>
    %cst = arith.constant 0.000000e+00 : f32
    %5 = vector.broadcast %cst : f32 to vector<128x128xf32>
    %6 = vector.extract_strided_slice %4 {offsets = [0, 0, 0], sizes = [10, 16, 128], strides = [1, 1, 1]} : vector<10x18x128xf32> to vector<10x16x128xf32>
    %7 = vector.shape_cast %6 : vector<10x16x128xf32> to vector<160x128xf32>
    %8 = vector.extract_strided_slice %7 {offsets = [0, 0], sizes = [128, 128], strides = [1, 1]} : vector<160x128xf32> to vector<128x128xf32>
    %c0_7 = arith.constant 0 : index
    %c0_8 = arith.constant 0 : index
    %c0_9 = arith.constant 0 : index
    %9 = vector.load %arg5[%c0_7, %c0_8, %c0_9] : memref<9x128x128xf32, #tpu.memory_space<vmem>>, vector<1x128x128xf32>
    %10 = vector.shape_cast %9 : vector<1x128x128xf32> to vector<128x128xf32>
    %cst_10 = arith.constant dense<0.000000e+00> : vector<128x128xf32>
    %11 = tpu.matmul %8, %10, %cst_10 {dimension_numbers = #tpu.dot_dimension_numbers<[1], [0], [0], [1], [0, 0, 1, 1], [], []>} : vector<128x128xf32>, vector<128x128xf32>, vector<128x128xf32> -> vector<128x128xf32>
    %12 = arith.addf %5, %11 : vector<128x128xf32>
    %13 = vector.extract_strided_slice %7 {offsets = [16, 0], sizes = [128, 128], strides = [1, 1]} : vector<160x128xf32> to vector<128x128xf32>
    %c3 = arith.constant 3 : index
    %c0_11 = arith.constant 0 : index
    %c0_12 = arith.constant 0 : index
    %14 = vector.load %arg5[%c3, %c0_11, %c0_12] : memref<9x128x128xf32, #tpu.memory_space<vmem>>, vector<1x128x128xf32>
    %15 = vector.shape_cast %14 : vector<1x128x128xf32> to vector<128x128xf32>
    %cst_13 = arith.constant dense<0.000000e+00> : vector<128x128xf32>
    %16 = tpu.matmul %13, %15, %cst_13 {dimension_numbers = #tpu.dot_dimension_numbers<[1], [0], [0], [1], [0, 0, 1, 1], [], []>} : vector<128x128xf32>, vector<128x128xf32>, vector<128x128xf32> -> vector<128x128xf32>
    %17 = arith.addf %12, %16 : vector<128x128xf32>
    %18 = vector.extract_strided_slice %7 {offsets = [32, 0], sizes = [128, 128], strides = [1, 1]} : vector<160x128xf32> to vector<128x128xf32>
    %c6 = arith.constant 6 : index
    %c0_14 = arith.constant 0 : index
    %c0_15 = arith.constant 0 : index
    %19 = vector.load %arg5[%c6, %c0_14, %c0_15] : memref<9x128x128xf32, #tpu.memory_space<vmem>>, vector<1x128x128xf32>
    %20 = vector.shape_cast %19 : vector<1x128x128xf32> to vector<128x128xf32>
    %cst_16 = arith.constant dense<0.000000e+00> : vector<128x128xf32>
    %21 = tpu.matmul %18, %20, %cst_16 {dimension_numbers = #tpu.dot_dimension_numbers<[1], [0], [0], [1], [0, 0, 1, 1], [], []>} : vector<128x128xf32>, vector<128x128xf32>, vector<128x128xf32> -> vector<128x128xf32>
    %22 = arith.addf %17, %21 : vector<128x128xf32>
    %23 = vector.extract_strided_slice %4 {offsets = [0, 1, 0], sizes = [10, 16, 128], strides = [1, 1, 1]} : vector<10x18x128xf32> to vector<10x16x128xf32>
    %24 = vector.shape_cast %23 : vector<10x16x128xf32> to vector<160x128xf32>
    %25 = vector.extract_strided_slice %24 {offsets = [0, 0], sizes = [128, 128], strides = [1, 1]} : vector<160x128xf32> to vector<128x128xf32>
    %c1 = arith.constant 1 : index
    %c0_17 = arith.constant 0 : index
    %c0_18 = arith.constant 0 : index
    %26 = vector.load %arg5[%c1, %c0_17, %c0_18] : memref<9x128x128xf32, #tpu.memory_space<vmem>>, vector<1x128x128xf32>
    %27 = vector.shape_cast %26 : vector<1x128x128xf32> to vector<128x128xf32>
    %cst_19 = arith.constant dense<0.000000e+00> : vector<128x128xf32>
    %28 = tpu.matmul %25, %27, %cst_19 {dimension_numbers = #tpu.dot_dimension_numbers<[1], [0], [0], [1], [0, 0, 1, 1], [], []>} : vector<128x128xf32>, vector<128x128xf32>, vector<128x128xf32> -> vector<128x128xf32>
    %29 = arith.addf %22, %28 : vector<128x128xf32>
    %30 = vector.extract_strided_slice %24 {offsets = [16, 0], sizes = [128, 128], strides = [1, 1]} : vector<160x128xf32> to vector<128x128xf32>
    %c4 = arith.constant 4 : index
    %c0_20 = arith.constant 0 : index
    %c0_21 = arith.constant 0 : index
    %31 = vector.load %arg5[%c4, %c0_20, %c0_21] : memref<9x128x128xf32, #tpu.memory_space<vmem>>, vector<1x128x128xf32>
    %32 = vector.shape_cast %31 : vector<1x128x128xf32> to vector<128x128xf32>
    %cst_22 = arith.constant dense<0.000000e+00> : vector<128x128xf32>
    %33 = tpu.matmul %30, %32, %cst_22 {dimension_numbers = #tpu.dot_dimension_numbers<[1], [0], [0], [1], [0, 0, 1, 1], [], []>} : vector<128x128xf32>, vector<128x128xf32>, vector<128x128xf32> -> vector<128x128xf32>
    %34 = arith.addf %29, %33 : vector<128x128xf32>
    %35 = vector.extract_strided_slice %24 {offsets = [32, 0], sizes = [128, 128], strides = [1, 1]} : vector<160x128xf32> to vector<128x128xf32>
    %c7 = arith.constant 7 : index
    %c0_23 = arith.constant 0 : index
    %c0_24 = arith.constant 0 : index
    %36 = vector.load %arg5[%c7, %c0_23, %c0_24] : memref<9x128x128xf32, #tpu.memory_space<vmem>>, vector<1x128x128xf32>
    %37 = vector.shape_cast %36 : vector<1x128x128xf32> to vector<128x128xf32>
    %cst_25 = arith.constant dense<0.000000e+00> : vector<128x128xf32>
    %38 = tpu.matmul %35, %37, %cst_25 {dimension_numbers = #tpu.dot_dimension_numbers<[1], [0], [0], [1], [0, 0, 1, 1], [], []>} : vector<128x128xf32>, vector<128x128xf32>, vector<128x128xf32> -> vector<128x128xf32>
    %39 = arith.addf %34, %38 : vector<128x128xf32>
    %40 = vector.extract_strided_slice %4 {offsets = [0, 2, 0], sizes = [10, 16, 128], strides = [1, 1, 1]} : vector<10x18x128xf32> to vector<10x16x128xf32>
    %41 = vector.shape_cast %40 : vector<10x16x128xf32> to vector<160x128xf32>
    %42 = vector.extract_strided_slice %41 {offsets = [0, 0], sizes = [128, 128], strides = [1, 1]} : vector<160x128xf32> to vector<128x128xf32>
    %c2 = arith.constant 2 : index
    %c0_26 = arith.constant 0 : index
    %c0_27 = arith.constant 0 : index
    %43 = vector.load %arg5[%c2, %c0_26, %c0_27] : memref<9x128x128xf32, #tpu.memory_space<vmem>>, vector<1x128x128xf32>
    %44 = vector.shape_cast %43 : vector<1x128x128xf32> to vector<128x128xf32>
    %cst_28 = arith.constant dense<0.000000e+00> : vector<128x128xf32>
    %45 = tpu.matmul %42, %44, %cst_28 {dimension_numbers = #tpu.dot_dimension_numbers<[1], [0], [0], [1], [0, 0, 1, 1], [], []>} : vector<128x128xf32>, vector<128x128xf32>, vector<128x128xf32> -> vector<128x128xf32>
    %46 = arith.addf %39, %45 : vector<128x128xf32>
    %47 = vector.extract_strided_slice %41 {offsets = [16, 0], sizes = [128, 128], strides = [1, 1]} : vector<160x128xf32> to vector<128x128xf32>
    %c5 = arith.constant 5 : index
    %c0_29 = arith.constant 0 : index
    %c0_30 = arith.constant 0 : index
    %48 = vector.load %arg5[%c5, %c0_29, %c0_30] : memref<9x128x128xf32, #tpu.memory_space<vmem>>, vector<1x128x128xf32>
    %49 = vector.shape_cast %48 : vector<1x128x128xf32> to vector<128x128xf32>
    %cst_31 = arith.constant dense<0.000000e+00> : vector<128x128xf32>
    %50 = tpu.matmul %47, %49, %cst_31 {dimension_numbers = #tpu.dot_dimension_numbers<[1], [0], [0], [1], [0, 0, 1, 1], [], []>} : vector<128x128xf32>, vector<128x128xf32>, vector<128x128xf32> -> vector<128x128xf32>
    %51 = arith.addf %46, %50 : vector<128x128xf32>
    %52 = vector.extract_strided_slice %41 {offsets = [32, 0], sizes = [128, 128], strides = [1, 1]} : vector<160x128xf32> to vector<128x128xf32>
    %c8 = arith.constant 8 : index
    %c0_32 = arith.constant 0 : index
    %c0_33 = arith.constant 0 : index
    %53 = vector.load %arg5[%c8, %c0_32, %c0_33] : memref<9x128x128xf32, #tpu.memory_space<vmem>>, vector<1x128x128xf32>
    %54 = vector.shape_cast %53 : vector<1x128x128xf32> to vector<128x128xf32>
    %cst_34 = arith.constant dense<0.000000e+00> : vector<128x128xf32>
    %55 = tpu.matmul %52, %54, %cst_34 {dimension_numbers = #tpu.dot_dimension_numbers<[1], [0], [0], [1], [0, 0, 1, 1], [], []>} : vector<128x128xf32>, vector<128x128xf32>, vector<128x128xf32> -> vector<128x128xf32>
    %56 = arith.addf %51, %55 : vector<128x128xf32>
    %57 = vector.shape_cast %56 : vector<128x128xf32> to vector<8x16x128xf32>
    %c0_35 = arith.constant 0 : index
    %c0_36 = arith.constant 0 : index
    %c0_37 = arith.constant 0 : index
    %c0_38 = arith.constant 0 : index
    %58 = vector.load %arg6[%c0_35, %c0_36, %c0_37, %c0_38] : memref<1x8x16x128xf32, #tpu.memory_space<vmem>>, vector<1x8x16x128xf32>
    %59 = vector.shape_cast %58 : vector<1x8x16x128xf32> to vector<8x16x128xf32>
    %60 = vector.shape_cast %57 : vector<8x16x128xf32> to vector<1x8x16x128xf32>
    tpu.vector_store %arg6[%c0_35, %c0_36, %c0_37, %c0_38], %60 {strides = array<i32>} : memref<1x8x16x128xf32, #tpu.memory_space<vmem>>, vector<1x8x16x128xf32>,
    %cst_39 = arith.constant dense<0.000000e+00> : vector<128xf32>
    %61 = vector.multi_reduction <add>, %56, %cst_39 [0] : vector<128x128xf32> to vector<128xf32>
    %62 = vector.shape_cast %61 : vector<128xf32> to vector<1x128xf32>
    %63 = arith.mulf %56, %56 : vector<128x128xf32>
    %cst_40 = arith.constant dense<0.000000e+00> : vector<128xf32>
    %64 = vector.multi_reduction <add>, %63, %cst_40 [0] : vector<128x128xf32> to vector<128xf32>
    %65 = vector.shape_cast %64 : vector<128xf32> to vector<1x128xf32>
    %66 = tpu.concatenate %62, %65 in 0 : vector<1x128xf32>, vector<1x128xf32> -> vector<2x128xf32>
    %c0_41 = arith.constant 0 : index
    %c0_42 = arith.constant 0 : index
    %c0_43 = arith.constant 0 : index
    %c0_44 = arith.constant 0 : index
    %67 = vector.load %arg7[%c0_41, %c0_42, %c0_43, %c0_44] : memref<1x1x2x128xf32, #tpu.memory_space<vmem>>, vector<1x1x2x128xf32>
    %68 = vector.shape_cast %67 : vector<1x1x2x128xf32> to vector<2x128xf32>
    %69 = vector.shape_cast %66 : vector<2x128xf32> to vector<1x1x2x128xf32>
    tpu.vector_store %arg7[%c0_41, %c0_42, %c0_43, %c0_44], %69 {strides = array<i32>} : memref<1x1x2x128xf32, #tpu.memory_space<vmem>>, vector<1x1x2x128xf32>,
    return
  }
  func.func @transform_0(%arg0: i32, %arg1: i32, %arg2: i32) -> (i32, i32, i32, i32) {
    %c0_i32 = arith.constant 0 : i32
    %c0_i32_0 = arith.constant 0 : i32
    %c0_i32_1 = arith.constant 0 : i32
    return %arg0, %arg1, %c0_i32, %c0_i32_0 : i32, i32, i32, i32
  }
  func.func @transform_1(%arg0: i32, %arg1: i32, %arg2: i32) -> (i32, i32, i32, i32) {
    %c1_i32 = arith.constant 1 : i32
    %0 = arith.addi %arg1, %c1_i32 : i32
    %c4_i32 = arith.constant 4 : i32
    %1 = arith.muli %0, %c4_i32 : i32
    %c0_i32 = arith.constant 0 : i32
    %c0_i32_0 = arith.constant 0 : i32
    %c0_i32_1 = arith.constant 0 : i32
    return %arg0, %1, %c0_i32, %c0_i32_0 : i32, i32, i32, i32
  }
  func.func @transform_2(%arg0: i32, %arg1: i32, %arg2: i32) -> (i32, i32, i32) {
    %c0_i32 = arith.constant 0 : i32
    %c0_i32_0 = arith.constant 0 : i32
    %c0_i32_1 = arith.constant 0 : i32
    return %c0_i32, %c0_i32_0, %arg2 : i32, i32, i32
  }
  func.func @transform_3(%arg0: i32, %arg1: i32, %arg2: i32) -> (i32, i32, i32, i32) {
    %c0_i32 = arith.constant 0 : i32
    %c0_i32_0 = arith.constant 0 : i32
    return %arg0, %arg1, %c0_i32, %arg2 : i32, i32, i32, i32
  }
  func.func @transform_4(%arg0: i32, %arg1: i32, %arg2: i32) -> (i32, i32, i32, i32) {
    %c0_i32 = arith.constant 0 : i32
    %c0_i32_0 = arith.constant 0 : i32
    return %arg0, %arg1, %c0_i32, %arg2 : i32, i32, i32, i32
  }
}

module attributes {stable_mosaic.version = 11 : i64} {
  func.func @_bn_relu_kernel(%arg0: i32, %arg1: i32, %arg2: i32, %arg3: memref<1x8x16x128xf32, #tpu.memory_space<vmem>>, %arg4: memref<1x128xf32, #tpu.memory_space<vmem>>, %arg5: memref<1x128xf32, #tpu.memory_space<vmem>>, %arg6: memref<1x8x16x128xf32, #tpu.memory_space<vmem>>) attributes {dimension_semantics = [#tpu.dimension_semantics<parallel>, #tpu.dimension_semantics<parallel>, #tpu.dimension_semantics<parallel>], iteration_bounds = array<i64: 2, 2, 1>, scalar_prefetch = 0 : i64, scratch_operands = 0 : i64, tpu.core_type = #tpu.core_type<tc>, window_params = [{transform_indices = @transform_0, window_bounds = array<i64: 1, 8, 16, 128>}, {transform_indices = @transform_1, window_bounds = array<i64: 1, 128>}, {transform_indices = @transform_2, window_bounds = array<i64: 1, 128>}, {transform_indices = @transform_3, window_bounds = array<i64: 1, 8, 16, 128>}]} {
    %c0 = arith.constant 0 : index
    %c0_0 = arith.constant 0 : index
    %c0_1 = arith.constant 0 : index
    %c0_2 = arith.constant 0 : index
    %0 = vector.load %arg3[%c0, %c0_0, %c0_1, %c0_2] : memref<1x8x16x128xf32, #tpu.memory_space<vmem>>, vector<1x8x16x128xf32>
    %c0_3 = arith.constant 0 : index
    %c0_4 = arith.constant 0 : index
    %1 = vector.load %arg4[%c0_3, %c0_4] : memref<1x128xf32, #tpu.memory_space<vmem>>, vector<1x128xf32>
    %2 = vector.shape_cast %1 : vector<1x128xf32> to vector<1x1x1x128xf32>
    %c0_5 = arith.constant 0 : index
    %c0_6 = arith.constant 0 : index
    %3 = vector.load %arg5[%c0_5, %c0_6] : memref<1x128xf32, #tpu.memory_space<vmem>>, vector<1x128xf32>
    %4 = vector.shape_cast %3 : vector<1x128xf32> to vector<1x1x1x128xf32>
    %5 = vector.broadcast %2 : vector<1x1x1x128xf32> to vector<1x8x16x128xf32>
    %6 = arith.mulf %0, %5 : vector<1x8x16x128xf32>
    %7 = vector.broadcast %4 : vector<1x1x1x128xf32> to vector<1x8x16x128xf32>
    %8 = arith.addf %6, %7 : vector<1x8x16x128xf32>
    %cst = arith.constant 0.000000e+00 : f32
    %9 = vector.broadcast %cst : f32 to vector<1x8x16x128xf32>
    %10 = arith.maximumf %8, %9 : vector<1x8x16x128xf32>
    %c0_7 = arith.constant 0 : index
    %c0_8 = arith.constant 0 : index
    %c0_9 = arith.constant 0 : index
    %c0_10 = arith.constant 0 : index
    %11 = vector.load %arg6[%c0_7, %c0_8, %c0_9, %c0_10] : memref<1x8x16x128xf32, #tpu.memory_space<vmem>>, vector<1x8x16x128xf32>
    tpu.vector_store %arg6[%c0_7, %c0_8, %c0_9, %c0_10], %10 {strides = array<i32>} : memref<1x8x16x128xf32, #tpu.memory_space<vmem>>, vector<1x8x16x128xf32>,
    return
  }
  func.func @transform_0(%arg0: i32, %arg1: i32, %arg2: i32) -> (i32, i32, i32, i32) {
    %c0_i32 = arith.constant 0 : i32
    %c0_i32_0 = arith.constant 0 : i32
    return %arg0, %arg1, %c0_i32, %arg2 : i32, i32, i32, i32
  }
  func.func @transform_1(%arg0: i32, %arg1: i32, %arg2: i32) -> (i32, i32) {
    %c0_i32 = arith.constant 0 : i32
    %c0_i32_0 = arith.constant 0 : i32
    return %c0_i32, %arg2 : i32, i32
  }
  func.func @transform_2(%arg0: i32, %arg1: i32, %arg2: i32) -> (i32, i32) {
    %c0_i32 = arith.constant 0 : i32
    %c0_i32_0 = arith.constant 0 : i32
    return %c0_i32, %arg2 : i32, i32
  }
  func.func @transform_3(%arg0: i32, %arg1: i32, %arg2: i32) -> (i32, i32, i32, i32) {
    %c0_i32 = arith.constant 0 : i32
    %c0_i32_0 = arith.constant 0 : i32
    return %arg0, %arg1, %c0_i32, %arg2 : i32, i32, i32, i32
  }
}

</mosaic_0001>

<bundles_post_ra>
// kernel: double_conv_pallas.5
= control target key start
LH: loop header
LB: loop body
LE: loop exit
PB: predicated region body
PF: predicated region fallthrough
CT: control target
= control target key end

     0   :  { %s615_s12 = smov 0   ;;  %s617_s13 = smov 0   ;;  %s726_s0 = inlined_call_operand.vmem [shape: f32[2,16,16,128], index: 0, kind: input, shape index: {}]   ;;  %s727_s1 = inlined_call_operand.vmem [shape: f32[1,128], index: 1, kind: input, shape index: {}]   ;;  %s728_s2 = inlined_call_operand.vmem [shape: f32[1,128], index: 2, kind: input, shape index: {}]   ;;  %s729_s3 = inlined_call_operand.vmem [shape: f32[2,16,16,128], index: 3, kind: output, shape index: {}]  }
   0x1   :  { %s619_s14 = smov 0   ;;  %s621_s15 = smov 0  }
   0x2   :  { %s623_s16 = smov 0  }
   0x3 LB: > { %s28_s17 = sadd.s32 1, %s585_s14  ;;  %s32_s18 = sadd.s32 1, %s589_s15  ;;  %s593_s16 = sphi %s623_s16, %s13_s16   ;;  %s589_s15 = sphi %s621_s15, %s733_s15   ;;  %s585_s14 = sphi %s619_s14, %s732_s14   ;;  %s581_s13 = sphi %s617_s13, %s731_s13   ;;  %s577_s12 = sphi %s615_s12, %s730_s12  }
   0x4   : > { %p30_p0 = scmp.ge.s32.totalorder %s28_s17, 2  ;;  %p502_p1 = scmp.ge.s32.totalorder %s593_s16, 1 }
   0x5   : > { %p189_p2 = scmp.lt.s32.totalorder %s593_s16, 5 }
   0x6   : > { %s735_s17 = smov (%p30_p0, %s28_s17), 0  ;;  %s737_s18 = smov (!%p30_p0, %s32_s18), %s589_s15 }
   0x7   : > { %p190_p3 = pnand %p502_p1, %p189_p2  ;;  %p34_p4 = scmp.ge.s32.totalorder %s737_s18, 2 }
   0x8   : > { %s503_s19 = sshll.u32 (!%p190_p3), %s577_s12, 3  ;;  %p236_p5 = scmp.lt.s32.totalorder (!%p190_p3), %s581_s13, 1 }
   0x9   : > { %s739_s18 = smov (%p34_p4, %s737_s18), 0  ;;  %193 = sbr.rel (%p190_p3) target bundleno = 42 (0x2a), region = 32 }
   0xa   : > { %p238_p6 = scmp.lt.s32.totalorder (!%p190_p3), %s503_s19, 15 }
   0xe   : > { %s741_s13 = smov (!%p236_p5, %s581_s13), 1  ;;  %s743_s19 = smov (!%p238_p6, %s503_s19), 15  ;;  %v553_v0 = vld [vmem:[%s727_s1] ss:$0 sm:$0xff] }
   0xf   : > { %s505_s20 = sshll.u32 %s741_s13, 5  ;;  %s504_s21 = sshll.u32 %s743_s19, 1  ;;  %v656_v1 = vld [vmem:[%s728_s2] ss:$0 sm:$0xff] }
  0x10   : > { %s245_s22 = sadd.s32 %s505_s20, %s504_s21 }
  0x11   : > { %s506_s25 = sshll.u32 %s245_s22, 3 }
  0x12   : > { %s651_s28 = scalar_lea.vmem %s726_s0, %s506_s25  ;;  %s672_s6 = scalar_lea.vmem %s729_s3, %s506_s25 }
  0x13   : > { %v269_v2 = vld [vmem:[%s651_s28] sm:$0xff]  ;;  %v270_v3 = vld [vmem:[%s651_s28 + $0x8] sm:$0xff]  ;;  %v271_v4 = vld [vmem:[%s651_s28 + $0x10] sm:$0xff] }
  0x14   : > { %v290_v5 = vmul.f32 %v553_v0, %v269_v2  ;;  %v291_v6 = vmul.f32 %v553_v0, %v270_v3  ;;  %v292_v7 = vmul.f32 %v553_v0, %v271_v4  ;;  %v272_v8 = vld [vmem:[%s651_s28 + $0x18] sm:$0xff]  ;;  %v273_v9 = vld [vmem:[%s651_s28 + $0x20] sm:$0xff]  ;;  %v274_v10 = vld [vmem:[%s651_s28 + $0x28] sm:$0xff] }
  0x15   : > { %v293_v11 = vmul.f32 %v553_v0, %v272_v8  ;;  %v294_v12 = vmul.f32 %v553_v0, %v273_v9  ;;  %v295_v13 = vmul.f32 %v553_v0, %v274_v10  ;;  %v275_v14 = vld [vmem:[%s651_s28 + $0x30] sm:$0xff]  ;;  %v276_v15 = vld [vmem:[%s651_s28 + $0x38] sm:$0xff]  ;;  %v277_v24 = vld [vmem:[%s651_s28 + $0x40] sm:$0xff] }
  0x16   : > { %v309_v16 = vadd.f32 %v656_v1, %v290_v5  ;;  %v310_v17 = vadd.f32 %v656_v1, %v291_v6  ;;  %v311_v18 = vadd.f32 %v656_v1, %v292_v7  ;;  %v296_v19 = vmul.f32 %v553_v0, %v275_v14  ;;  %v278_v25 = vld [vmem:[%s651_s28 + $0x48] sm:$0xff]  ;;  %v279_v26 = vld [vmem:[%s651_s28 + $0x50] sm:$0xff]  ;;  %v280_v31 = vld [vmem:[%s651_s28 + $0x58] sm:$0xff] }
  0x17   : > { %v312_v20 = vadd.f32 %v656_v1, %v293_v11  ;;  %v313_v21 = vadd.f32 %v656_v1, %v294_v12  ;;  %v314_v22 = vadd.f32 %v656_v1, %v295_v13  ;;  %v297_v23 = vmul.f32 %v553_v0, %v276_v15  ;;  %v281_v32 = vld [vmem:[%s651_s28 + $0x60] sm:$0xff]  ;;  %v282_v33 = vld [vmem:[%s651_s28 + $0x68] sm:$0xff]  ;;  %v283_v37 = vld [vmem:[%s651_s28 + $0x70] sm:$0xff] }
  0x18   : > { %v325_v27 = vmax.f32 %v309_v16, 0.0  ;;  %v326_v28 = vmax.f32 %v310_v17, 0.0  ;;  %v327_v29 = vmax.f32 %v311_v18, 0.0  ;;  %v315_v30 = vadd.f32 %v656_v1, %v296_v19  ;;  %v284_v42 = vld [vmem:[%s651_s28 + $0x78] sm:$0xff] }
  0x19   : > { %v328_v34 = vmax.f32 %v312_v20, 0.0  ;;  %v329_v35 = vmax.f32 %v313_v21, 0.0  ;;  %v316_v36 = vadd.f32 %v656_v1, %v297_v23  ;;  %v330_v38 = vmax.f32 %v314_v22, 0.0 }
  0x1a   : > { %341 = vst [vmem:[%s672_s6] sm:$0xff] %v325_v27  ;;  %v298_v39 = vmul.f32 %v553_v0, %v277_v24  ;;  %v299_v40 = vmul.f32 %v553_v0, %v278_v25  ;;  %v300_v41 = vmul.f32 %v553_v0, %v279_v26  ;;  %v331_v43 = vmax.f32 %v315_v30, 0.0 }
  0x1b   : > { %342 = vst [vmem:[%s672_s6 + $0x8] sm:$0xff] %v326_v28  ;;  %v301_v44 = vmul.f32 %v553_v0, %v280_v31  ;;  %v302_v45 = vmul.f32 %v553_v0, %v281_v32  ;;  %v303_v46 = vmul.f32 %v553_v0, %v282_v33  ;;  %v304_v50 = vmul.f32 %v553_v0, %v283_v37 }
  0x1c   : > { %343 = vst [vmem:[%s672_s6 + $0x10] sm:$0xff] %v327_v29  ;;  %v317_v47 = vadd.f32 %v656_v1, %v298_v39  ;;  %v318_v48 = vadd.f32 %v656_v1, %v299_v40  ;;  %v319_v49 = vadd.f32 %v656_v1, %v300_v41  ;;  %v332_v51 = vmax.f32 %v316_v36, 0.0 }
  0x1d   : > { %344 = vst [vmem:[%s672_s6 + $0x18] sm:$0xff] %v328_v34  ;;  %v320_v52 = vadd.f32 %v656_v1, %v301_v44  ;;  %v305_v53 = vmul.f32 %v553_v0, %v284_v42  ;;  %v321_v55 = vadd.f32 %v656_v1, %v302_v45  ;;  %v322_v57 = vadd.f32 %v656_v1, %v303_v46 }
  0x1e   : > { %345 = vst [vmem:[%s672_s6 + $0x20] sm:$0xff] %v329_v35  ;;  %v333_v54 = vmax.f32 %v317_v47, 0.0  ;;  %v334_v56 = vmax.f32 %v318_v48, 0.0  ;;  %v335_v58 = vmax.f32 %v319_v49, 0.0  ;;  %v323_v59 = vadd.f32 %v656_v1, %v304_v50 }
  0x1f   : > { %346 = vst [vmem:[%s672_s6 + $0x28] sm:$0xff] %v330_v38  ;;  %v336_v60 = vmax.f32 %v320_v52, 0.0  ;;  %v324_v61 = vadd.f32 %v656_v1, %v305_v53  ;;  %v337_v62 = vmax.f32 %v321_v55, 0.0  ;;  %v338_v63 = vmax.f32 %v322_v57, 0.0 }
  0x20   : > { %347 = vst [vmem:[%s672_s6 + $0x30] sm:$0xff] %v331_v43  ;;  %v339_v0 = vmax.f32 %v323_v59, 0.0 }
  0x21   : > { %348 = vst [vmem:[%s672_s6 + $0x38] sm:$0xff] %v332_v51  ;;  %v340_v2 = vmax.f32 %v324_v61, 0.0 }
  0x22   : > { %349 = vst [vmem:[%s672_s6 + $0x40] sm:$0xff] %v333_v54 }
  0x23   : > { %350 = vst [vmem:[%s672_s6 + $0x48] sm:$0xff] %v334_v56 }
  0x24   : > { %351 = vst [vmem:[%s672_s6 + $0x50] sm:$0xff] %v335_v58 }
  0x25   : > { %352 = vst [vmem:[%s672_s6 + $0x58] sm:$0xff] %v336_v60 }
  0x26   : > { %353 = vst [vmem:[%s672_s6 + $0x60] sm:$0xff] %v337_v62 }
  0x27   : > { %354 = vst [vmem:[%s672_s6 + $0x68] sm:$0xff] %v338_v63 }
  0x28   : > { %355 = vst [vmem:[%s672_s6 + $0x70] sm:$0xff] %v339_v0 }
  0x29   : > { %356 = vst [vmem:[%s672_s6 + $0x78] sm:$0xff] %v340_v2 }
  0x2a PF: > { %s13_s16 = sadd.s32 1, %s593_s16   ;;  %s730_s12 = smov %s585_s14 }
  0x2b   : > { %p10_p7 = scmp.ge.s32.totalorder %s13_s16, 6   ;;  %s731_s13 = smov %s589_s15 }
  0x2c   : > { %s732_s14 = smov %s735_s17  ;;  %s733_s15 = smov %s739_s18 }
  0x2d   :  { %12 = sbr.rel (!%p10_p7) target bundleno = 3 (0x3), region = 68 }

// kernel: double_conv_pallas.4
= control target key start
LH: loop header
LB: loop body
LE: loop exit
PB: predicated region body
PF: predicated region fallthrough
CT: control target
= control target key end

     0   :  { %s2032_s15 = smov 0   ;;  %s2034_s16 = smov 0   ;;  %s2998_s0 = inlined_call_operand.vmem [shape: f32[2,18,18,128], index: 0, kind: input, shape index: {}, may-alias: {0,1}]   ;;  %s2999_s1 = inlined_call_operand.vmem [shape: f32[2,18,18,128], index: 1, kind: input, shape index: {}, may-alias: {0,1}]   ;;  %s3000_s2 = inlined_call_operand.vmem [shape: f32[9,128,128], index: 2, kind: input, shape index: {}]   ;;  %s3001_s3 = inlined_call_operand.vmem [shape: f32[2,16,16,128], index: 3, kind: output, shape index: {0}]   ;;  %s3002_s4 = inlined_call_operand.vmem [shape: f32[2,2,2,128], index: 4, kind: output, shape index: {1}]  }
   0x1   :  { %s2036_s17 = smov 0   ;;  %s2038_s18 = smov 0  }
   0x2   :  { %s2040_s19 = smov 0  }
   0x3 LB: > { %s30_s20 = sadd.s32 1, %s1997_s17  ;;  %s34_s21 = sadd.s32 1, %s2001_s18  ;;  %s2005_s19 = sphi %s2040_s19, %s15_s19   ;;  %s2001_s18 = sphi %s2038_s18, %s3011_s18   ;;  %s1997_s17 = sphi %s2036_s17, %s3010_s17   ;;  %s1993_s16 = sphi %s2034_s16, %s3009_s16   ;;  %s1989_s15 = sphi %s2032_s15, %s3008_s15  }
   0x4   : > { %p32_p0 = scmp.ge.s32.totalorder %s30_s20, 2  ;;  %p1721_p1 = scmp.ge.s32.totalorder %s2005_s19, 1 }
   0x5   : > { %p245_p2 = scmp.lt.s32.totalorder %s2005_s19, 5 }
   0x6   : > { %s3013_s20 = smov (%p32_p0, %s30_s20), 0  ;;  %s3015_s21 = smov (!%p32_p0, %s34_s21), %s2001_s18 }
   0x7   : > { %p246_p3 = pnand %p1721_p1, %p245_p2  ;;  %p36_p4 = scmp.ge.s32.totalorder %s3015_s21, 2 }
   0x9   : > { %s3017_s21 = smov (%p36_p4, %s3015_s21), 0  ;;  %249 = sbr.rel (%p246_p3) target bundleno = 488 (0x1e8), region = 32 }
   0xe   : > { %v1748_v0 = vld [vmem:[%s3000_s2 + $0x1f8] sm:$0xff]  ;;  %v1747_v1 = vld [vmem:[%s3000_s2 + $0x1f0] sm:$0xff]  ;;  %v1746_v2 = vld [vmem:[%s3000_s2 + $0x1e8] sm:$0xff]  ;;  %s2079_s30 = sshll.u32 %s1989_s15, 3  ;;  %p322_p5 = scmp.lt.s32.totalorder %s1993_s16, 1  ;;  %vm702_vm0 = vcmask 1046528  }
   0xf   : > { %1872 = vmatpush.msra.mxu1 %v1748_v0  ;;  %1873 = vmatpush.msra.mxu2 %v1748_v0  ;;  %v1745_v3 = vld [vmem:[%s3000_s2 + $0x1e0] sm:$0xff]  ;;  %v1744_v4 = vld [vmem:[%s3000_s2 + $0x1d8] sm:$0xff]  ;;  %v1743_v5 = vld [vmem:[%s3000_s2 + $0x1d0] sm:$0xff]  ;;  %p324_p6 = scmp.lt.s32.totalorder %s2079_s30, 17  ;;  %s1871_s25 = sadd.s32 8, %s2079_s30  ;;  %vm1067_vm1 = vcmask 1045504  }
  0x10   : > { %1874 = vmatpush.msra.mxu3 %v1748_v0  ;;  %444 = vmatpush.msra.mxu0 %v1748_v0  ;;  %v1742_v6 = vld [vmem:[%s3000_s2 + $0x1c8] sm:$0xff]  ;;  %s3019_s16 = smov (!%p322_p5, %s1993_s16), 1  ;;  %v1741_v7 = vld [vmem:[%s3000_s2 + $0x1c0] sm:$0xff]  ;;  %v1740_v8 = vld [vmem:[%s3000_s2 + $0x1b8] sm:$0xff]  ;;  %p2138_p7 = scmp.lt.s32.totalorder %s1871_s25, 17  ;;  %vm1506_vm2 = vcmask 1040384  }
  0x11   : > { %1875 = vmatpush.msra.mxu1 %v1747_v1  ;;  %1876 = vmatpush.msra.mxu2 %v1747_v1  ;;  %s325_s13 = scalar_select %p324_p6, %s2079_s30, 17  ;;  %v1739_v9 = vld [vmem:[%s3000_s2 + $0x1b0] sm:$0xff]  ;;  %v1738_v10 = vld [vmem:[%s3000_s2 + $0x1a8] sm:$0xff]  ;;  %v1737_v11 = vld [vmem:[%s3000_s2 + $0x1a0] sm:$0xff] }
  0x12   : > { %1877 = vmatpush.msra.mxu3 %v1747_v1  ;;  %445 = vmatpush.msra.mxu0 %v1747_v1  ;;  %s1921_s23 = smul.u32 54, %s3019_s16  ;;  %v1736_v12 = vld [vmem:[%s3000_s2 + $0x198] sm:$0xff]  ;;  %v1735_v13 = vld [vmem:[%s3000_s2 + $0x190] sm:$0xff]  ;;  %v1734_v14 = vld [vmem:[%s3000_s2 + $0x188] sm:$0xff]  ;;  %s3021_s25 = smov (!%p2138_p7, %s1871_s25), 17 }
  0x13   : > { %1878 = vmatpush.msra.mxu1 %v1746_v2  ;;  %1879 = vmatpush.msra.mxu2 %v1746_v2  ;;  %s1920_s26 = smul.u32 3, %s325_s13  ;;  %v1733_v15 = vld [vmem:[%s3000_s2 + $0x180] sm:$0xff]  ;;  %v1764_v18 = vld [vmem:[%s3000_s2 + $0x378] sm:$0xff]  ;;  %v1763_v21 = vld [vmem:[%s3000_s2 + $0x370] sm:$0xff]  ;;  %p359_p8 = scmp.lt.s32.totalorder %s2079_s30, 15 }
  0x14   : > { %1880 = vmatpush.msra.mxu3 %v1746_v2  ;;  %446 = vmatpush.msra.mxu0 %v1746_v2  ;;  %v426_v19 = vld [vmem:[%s3000_s2 + $0x78] sm:$0xff]  ;;  %v425_v23 = vld [vmem:[%s3000_s2 + $0x70] sm:$0xff]  ;;  %v1762_v24 = vld [vmem:[%s3000_s2 + $0x368] sm:$0xff]  ;;  %s1922_s11 = smul.u32 3, %s3021_s25  ;;  %p372_p9 = scmp.lt.s32.totalorder %s1989_s15, 1 }
  0x15   : > { %1881 = vmatpush.msra.mxu1 %v1745_v3  ;;  %1882 = vmatpush.msra.mxu2 %v1745_v3  ;;  %s328_s6 = sadd.s32 %s1921_s23, %s1920_s26  ;;  %v1780_v22 = vld [vmem:[%s3000_s2 + $0xf8] sm:$0xff]  ;;  %v1779_v25 = vld [vmem:[%s3000_s2 + $0xf0] sm:$0xff]  ;;  %v424_v26 = vld [vmem:[%s3000_s2 + $0x68] sm:$0xff]  ;;  %s3023_s30 = smov (!%p359_p8, %s2079_s30), 15 }
  0x16   : > { %1883 = vmatpush.msra.mxu3 %v1745_v3  ;;  %447 = vmatpush.msra.mxu0 %v1745_v3  ;;  %s1723_s9 = sshll.u32 %s328_s6, 3  ;;  %v1761_v28 = vld [vmem:[%s3000_s2 + $0x360] sm:$0xff]  ;;  %v1778_v29 = vld [vmem:[%s3000_s2 + $0xe8] sm:$0xff]  ;;  %v1760_v33 = vld [vmem:[%s3000_s2 + $0x358] sm:$0xff]  ;;  %s346_s8 = sadd.s32 %s1922_s11, %s1921_s23 }
  0x17   : > { %1884 = vmatpush.msra.mxu1 %v1744_v4  ;;  %1885 = vmatpush.msra.mxu2 %v1744_v4  ;;  %s2126_s24 = scalar_lea.vmem %s2998_s0, %s1723_s9  ;;  %v423_v30 = vld [vmem:[%s3000_s2 + $0x60] sm:$0xff]  ;;  %v422_v35 = vld [vmem:[%s3000_s2 + $0x58] sm:$0xff]  ;;  %v1759_v37 = vld [vmem:[%s3000_s2 + $0x350] sm:$0xff]  ;;  %s1726_s28 = sshll.u32 %s346_s8, 3 }
  0x18   : > { %1886 = vmatpush.msra.mxu3 %v1744_v4  ;;  %448 = vmatpush.msra.mxu0 %v1744_v4  ;;  %v2133_v16 = vld [vmem:[%s2126_s24 + $0x48] sm:$0xff]  ;;  %v2136_v17 = vld [vmem:[%s2126_s24 + $0x78] sm:$0xff]  ;;  %v2189_v31 = vld [vmem:[%s2126_s24 + $0x80] sm:$0xff]  ;;  %s2261_s26 = scalar_lea.vmem %s2999_s1, %s1726_s28  ;;  %s3025_s15 = smov (!%p372_p9, %s1989_s15), 1 }
  0x19   : > { %1887 = vmatpush.msra.mxu1 %v1743_v5  ;;  %1888 = vmatpush.msra.mxu2 %v1743_v5  ;;  %v2149_v20 = vld [vmem:[%s2126_s24 + $0xa8] sm:$0xff]  ;;  %v2177_v27 = vld [vmem:[%s2126_s24 + $0x18] sm:$0xff]  ;;  %v2193_v32 = vld [vmem:[%s2126_s24 + $0x50] sm:$0xff]  ;;  %s1731_s14 = sshll.u32 %s3019_s16, 1 }
  0x1a   : > { %1889 = vmatpush.msra.mxu3 %v1743_v5  ;;  %449 = vmatpush.msra.mxu0 %v1743_v5  ;;  %v1777_v34 = vld [vmem:[%s3000_s2 + $0xe0] sm:$0xff]  ;;  %v2207_v36 = vld [vmem:[%s2126_s24 + $0xb0] sm:$0xff]  ;;  %v1776_v38 = vld [vmem:[%s3000_s2 + $0xd8] sm:$0xff]  ;;  %s378_s22 = sadd.s32 %s1731_s14, %s3025_s15 }
  0x1b   : > { %1890 = vmatpush.msra.mxu1 %v1742_v6  ;;  %1891 = vmatpush.msra.mxu2 %v1742_v6  ;;  %v1796_v39 = vld [vmem:[%s3000_s2 + $0x278] sm:$0xff]  ;;  %v421_v40 = vld [vmem:[%s3000_s2 + $0x50] sm:$0xff]  ;;  %v1758_v41 = vld [vmem:[%s3000_s2 + $0x348] sm:$0xff]  ;;  %s1732_s23 = sshll.u32 %s378_s22, 1 }
  0x1c   : > { %1892 = vmatpush.msra.mxu3 %v1742_v6  ;;  %450 = vmatpush.msra.mxu0 %v1742_v6  ;;  %v1775_v42 = vld [vmem:[%s3000_s2 + $0xd0] sm:$0xff]  ;;  %v420_v44 = vld [vmem:[%s3000_s2 + $0x48] sm:$0xff]  ;;  %v1757_v45 = vld [vmem:[%s3000_s2 + $0x340] sm:$0xff]  ;;  %s380_s25 = scalar_lea.vmem %s3002_s4, %s1732_s23 }
  0x1d   : > { %1893 = vmatpush.msra.mxu1 %v1741_v7  ;;  %1894 = vmatpush.msra.mxu2 %v1741_v7  ;;  %v1795_v43 = vld [vmem:[%s3000_s2 + $0x270] sm:$0xff]  ;;  %v1774_v46 = vld [vmem:[%s3000_s2 + $0xc8] sm:$0xff]  ;;  %v419_v48 = vld [vmem:[%s3000_s2 + $0x40] sm:$0xff] }
  0x1e   : > { %1895 = vmatpush.msra.mxu3 %v1741_v7  ;;  %451 = vmatpush.msra.mxu0 %v1741_v7  ;;  %v1794_v47 = vld [vmem:[%s3000_s2 + $0x268] sm:$0xff]  ;;  %v2250_v49 = vld [vmem:[%s2126_s24 + $0x90] sm:$0xff]  ;;  %v2253_v50 = vld [vmem:[%s2126_s24 + $0x60] sm:$0xff] }
  0x1f   : > { %1896 = vmatpush.msra.mxu1 %v1740_v8  ;;  %1897 = vmatpush.msra.mxu2 %v1740_v8  ;;  %v1756_v51 = vld [vmem:[%s3000_s2 + $0x338] sm:$0xff]  ;;  %v1773_v52 = vld [vmem:[%s3000_s2 + $0xc0] sm:$0xff]  ;;  %v1755_v57 = vld [vmem:[%s3000_s2 + $0x330] sm:$0xff] }
  0x20   : > { %1898 = vmatpush.msra.mxu3 %v1740_v8  ;;  %452 = vmatpush.msra.mxu0 %v1740_v8  ;;  %v1793_v53 = vld [vmem:[%s3000_s2 + $0x260] sm:$0xff]  ;;  %v418_v54 = vld [vmem:[%s3000_s2 + $0x38] sm:$0xff]  ;;  %v417_v60 = vld [vmem:[%s3000_s2 + $0x30] sm:$0xff] }
  0x21   : > { %1899 = vmatpush.msra.mxu1 %v1739_v9  ;;  %1900 = vmatpush.msra.mxu2 %v1739_v9  ;;  %v2274_v55 = vld [vmem:[%s2126_s24 + $0x20] sm:$0xff]  ;;  %v1772_v58 = vld [vmem:[%s3000_s2 + $0xb8] sm:$0xff]  ;;  %v1754_v61 = vld [vmem:[%s3000_s2 + $0x328] sm:$0xff] }
  0x22   : > { %1901 = vmatpush.msra.mxu3 %v1739_v9  ;;  %453 = vmatpush.msra.mxu0 %v1739_v9  ;;  %v2278_v56 = vld [vmem:[%s2261_s26] sm:$0xff]  ;;  %v1792_v59 = vld [vmem:[%s3000_s2 + $0x258] sm:$0xff]  ;;  %v1771_v62 = vld [vmem:[%s3000_s2 + $0xb0] sm:$0xff] }
  0x23   : > { %1902 = vmatpush.msra.mxu1 %v1738_v10  ;;  %1903 = vmatpush.msra.mxu2 %v1738_v10  ;;  %v1791_v63 = vld [vmem:[%s3000_s2 + $0x250] sm:$0xff]  ;;  %v416_v0 = vld [vmem:[%s3000_s2 + $0x28] sm:$0xff]  ;;  %v1753_v1 = vld [vmem:[%s3000_s2 + $0x320] sm:$0xff] }
  0x24   : > { %1904 = vmatpush.msra.mxu3 %v1738_v10  ;;  %454 = vmatpush.msra.mxu0 %v1738_v10  ;;  %v1770_v2 = vld [vmem:[%s3000_s2 + $0xa8] sm:$0xff]  ;;  %v415_v4 = vld [vmem:[%s3000_s2 + $0x20] sm:$0xff]  ;;  %v2319_v5 = vld [vmem:[%s2126_s24 + $0x98] sm:$0xff] }
  0x25   : > { %1905 = vmatpush.msra.mxu1 %v1737_v11  ;;  %1906 = vmatpush.msra.mxu2 %v1737_v11  ;;  %v1790_v3 = vld [vmem:[%s3000_s2 + $0x248] sm:$0xff]  ;;  %v1752_v7 = vld [vmem:[%s3000_s2 + $0x318] sm:$0xff]  ;;  %v1769_v8 = vld [vmem:[%s3000_s2 + $0xa0] sm:$0xff] }
  0x26   : > { %1907 = vmatpush.msra.mxu3 %v1737_v11  ;;  %455 = vmatpush.msra.mxu0 %v1737_v11  ;;  %v2322_v6 = vld [vmem:[%s2126_s24 + $0x68] sm:$0xff]  ;;  %v1789_v9 = vld [vmem:[%s3000_s2 + $0x240] sm:$0xff]  ;;  %v414_v10 = vld [vmem:[%s3000_s2 + $0x18] sm:$0xff] }
  0x27   : > { %1908 = vmatpush.msra.mxu1 %v1736_v12  ;;  %1909 = vmatpush.msra.mxu2 %v1736_v12  ;;  %v2338_v11 = vld [vmem:[%s2126_s24 + $0x30] sm:$0xff] }
  0x28   : > { %1910 = vmatpush.msra.mxu3 %v1736_v12  ;;  %456 = vmatpush.msra.mxu0 %v1736_v12  ;;  %v2342_v12 = vld [vmem:[%s2261_s26 + $0x8] sm:$0xff] }
  0x29   : > { %1911 = vmatpush.msra.mxu1 %v1735_v13  ;;  %1912 = vmatpush.msra.mxu2 %v1735_v13 }
  0x2a   : > { %1913 = vmatpush.msra.mxu3 %v1735_v13  ;;  %457 = vmatpush.msra.mxu0 %v1735_v13  ;;  %v1751_v13 = vld [vmem:[%s3000_s2 + $0x310] sm:$0xff] }
  0x2b   : > { %1914 = vmatpush.msra.mxu1 %v1734_v14  ;;  %1915 = vmatpush.msra.mxu2 %v1734_v14 }
  0x2c   : > { %1916 = vmatpush.msra.mxu3 %v1734_v14  ;;  %458 = vmatpush.msra.mxu0 %v1734_v14  ;;  %v1768_v14 = vld [vmem:[%s3000_s2 + $0x98] sm:$0xff] }
  0x2d   : > { %1917 = vmatpush.msra.mxu1 %v1733_v15  ;;  %1918 = vmatpush.msra.mxu2 %v1733_v15 }
  0x2e   : > { %472 = vmatmul.f32.vlgmr.msra.gmra.mxu1 %v2133_v16  ;;  %484 = vmatmul.f32.vlgmr.msra.gmra.mxu2 %v2136_v17 }
  0x2f   : > { %591 = vmatpush.msrb.mxu2 %v1764_v18  ;;  %1919 = vmatpush.msra.mxu3 %v1733_v15  ;;  %v413_v18 = vld [vmem:[%s3000_s2 + $0x10] sm:$0xff] }
  0x30   : > { %509 = vmatpush.msrb.mxu1 %v426_v19  ;;  %496 = vmatmul.f32.vlgmr.msra.gmra.mxu3 %v2149_v20  ;;  %v1750_v19 = vld [vmem:[%s3000_s2 + $0x308] sm:$0xff] }
  0x31   : > { %592 = vmatpush.msrb.mxu2 %v1763_v21  ;;  %790 = vmatpush.msrb.mxu3 %v1780_v22  ;;  %v2361_v21 = vld [vmem:[%s2126_s24] sm:$0xff]  ;;  %v2364_v22 = vld [vmem:[%s2126_s24 + $0x8] sm:$0xff] }
  0x32   : > { %510 = vmatpush.msrb.mxu1 %v425_v23  ;;  %459 = vmatpush.msra.mxu0 %v1733_v15  ;;  %v1788_v15 = vld [vmem:[%s3000_s2 + $0x238] sm:$0xff]  ;;  %v1767_v23 = vld [vmem:[%s3000_s2 + $0x90] sm:$0xff] }
  0x33   : > { %593 = vmatpush.msrb.mxu2 %v1762_v24  ;;  %791 = vmatpush.msrb.mxu3 %v1779_v25  ;;  %v1787_v24 = vld [vmem:[%s3000_s2 + $0x230] sm:$0xff]  ;;  %v412_v25 = vld [vmem:[%s3000_s2 + $0x8] sm:$0xff] }
  0x34   : > { %511 = vmatpush.msrb.mxu1 %v424_v26  ;;  %460 = vmatmul.f32.vlgmr.msra.gmra.mxu0 %v2177_v27  ;;  %v1749_v26 = vld [vmem:[%s3000_s2 + $0x300] sm:$0xff] }
  0x35   : > { %594 = vmatpush.msrb.mxu2 %v1761_v28  ;;  %792 = vmatpush.msrb.mxu3 %v1778_v29  ;;  %v1766_v28 = vld [vmem:[%s3000_s2 + $0x88] sm:$0xff] }
  0x36   : > { %512 = vmatpush.msrb.mxu1 %v423_v30  ;;  %487 = vmatmul.f32.gmra.mxu2 %v2189_v31  ;;  %v1786_v29 = vld [vmem:[%s3000_s2 + $0x228] sm:$0xff]  ;;  %v703_v30 = vrot.slane %v2361_v21, 1 }
  0x37   : > { %475 = vmatmul.f32.gmra.mxu1 %v2193_v32  ;;  %595 = vmatpush.msrb.mxu2 %v1760_v33  ;;  %v704_v33 = vrot.slane %v2364_v22, 1 }
  0x38   : > { %793 = vmatpush.msrb.mxu3 %v1777_v34  ;;  %513 = vmatpush.msrb.mxu1 %v422_v35  ;;  %v411_v34 = vld [vmem:[%s3000_s2] sm:$0xff] }
  0x39   : > { %499 = vmatmul.f32.gmra.mxu3 %v2207_v36  ;;  %596 = vmatpush.msrb.mxu2 %v1759_v37  ;;  %v1765_v35 = vld [vmem:[%s3000_s2 + $0x80] sm:$0xff] }
  0x3a   : > { %794 = vmatpush.msrb.mxu3 %v1776_v38  ;;  %888 = vmatpush.msrb.mxu0 %v1796_v39  ;;  %v1785_v37 = vld [vmem:[%s3000_s2 + $0x220] sm:$0xff]  ;;  %v1828_v38 = vld [vmem:[%s3000_s2 + $0x178] sm:$0xff] }
  0x3b   : > { %514 = vmatpush.msrb.mxu1 %v421_v40  ;;  %597 = vmatpush.msrb.mxu2 %v1758_v41  ;;  %v2401_v39 = vld [vmem:[%s2126_s24 + $0x38] sm:$0xff]  ;;  %v705_v40 = vsel %vm702_vm0, %v703_v30, %v704_v33  ;;  %v713_v30 = vrot.slane %v2338_v11, 1 }
  0x3c   : > { %795 = vmatpush.msrb.mxu3 %v1775_v42  ;;  %889 = vmatpush.msrb.mxu0 %v1795_v43  ;;  %v1784_v41 = vld [vmem:[%s3000_s2 + $0x218] sm:$0xff]  ;;  %v2412_v43 = vld [vmem:[%s2126_s24 + $0x10] sm:$0x3] }
  0x3d   : > { %515 = vmatpush.msrb.mxu1 %v420_v44  ;;  %598 = vmatpush.msrb.mxu2 %v1757_v45  ;;  %v1844_v42 = vld [vmem:[%s3000_s2 + $0x2f8] sm:$0xff]  ;;  %v1827_v45 = vld [vmem:[%s3000_s2 + $0x170] sm:$0xff] }
  0x3e   : > { %796 = vmatpush.msrb.mxu3 %v1774_v46  ;;  %890 = vmatpush.msrb.mxu0 %v1794_v47  ;;  %v1812_v44 = vld [vmem:[%s3000_s2 + $0x3f8] sm:$0xff]  ;;  %v1783_v46 = vld [vmem:[%s3000_s2 + $0x210] sm:$0xff] }
  0x3f   : > { %516 = vmatpush.msrb.mxu1 %v419_v48  ;;  %490 = vmatmul.f32.gmra.mxu2 %v2250_v49  ;;  %v1843_v47 = vld [vmem:[%s3000_s2 + $0x2f0] sm:$0xff]  ;;  %v706_v48 = vrot.slane %v2412_v43, 1 }
  0x40   : > { %478 = vmatmul.f32.gmra.mxu1 %v2253_v50  ;;  %599 = vmatpush.msrb.mxu2 %v1756_v51  ;;  %v708_v51 = vrot.slane %v2177_v27, 1 }
  0x41   : > { %797 = vmatpush.msrb.mxu3 %v1773_v52  ;;  %891 = vmatpush.msrb.mxu0 %v1793_v53  ;;  %v709_v52 = vrot.slane %v2274_v55, 1  ;;  %v1811_v53 = vld [vmem:[%s3000_s2 + $0x3f0] sm:$0xff] }
  0x42   : > { %517 = vmatpush.msrb.mxu1 %v418_v54  ;;  %463 = vmatmul.f32.gmra.mxu0 %v2274_v55  ;;  %v1826_v54 = vld [vmem:[%s3000_s2 + $0x168] sm:$0xff] }
  0x43   : > { %502 = vmatmul.f32.gmra.mxu3 %v2278_v56  ;;  %600 = vmatpush.msrb.mxu2 %v1755_v57  ;;  %v1782_v57 = vld [vmem:[%s3000_s2 + $0x208] sm:$0xff] }
  0x44   : > { %798 = vmatpush.msrb.mxu3 %v1772_v58  ;;  %892 = vmatpush.msrb.mxu0 %v1792_v59  ;;  %v1842_v58 = vld [vmem:[%s3000_s2 + $0x2e8] sm:$0xff]  ;;  %v1781_v59 = vld [vmem:[%s3000_s2 + $0x200] sm:$0xff] }
  0x45   : > { %518 = vmatpush.msrb.mxu1 %v417_v60  ;;  %601 = vmatpush.msrb.mxu2 %v1754_v61  ;;  %v1810_v60 = vld [vmem:[%s3000_s2 + $0x3e8] sm:$0xff]  ;;  %v707_v61 = vsel %vm702_vm0, %v704_v33, %v706_v48  ;;  %v714_v33 = vrot.slane %v2401_v39, 1  ;;  %v1804_v48 = vld [vmem:[%s3000_s2 + $0x3b8] sm:$0xff] }
  0x46   : > { %799 = vmatpush.msrb.mxu3 %v1771_v62  ;;  %893 = vmatpush.msrb.mxu0 %v1791_v63  ;;  %v710_v62 = vsel %vm702_vm0, %v708_v51, %v709_v52  ;;  %v1860_v63 = vld [vmem:[%s3000_s2 + $0x478] sm:$0xff]  ;;  %v718_v51 = vrot.slane %v2133_v16, 1 }
  0x47   : > { %519 = vmatpush.msrb.mxu1 %v416_v0  ;;  %602 = vmatpush.msrb.mxu2 %v1753_v1  ;;  %v2456_v0 = vld [vmem:[%s2126_s24 + $0x28] sm:$0x3]  ;;  %v1825_v1 = vld [vmem:[%s3000_s2 + $0x160] sm:$0xff] }
  0x48   : > { %800 = vmatpush.msrb.mxu3 %v1770_v2  ;;  %894 = vmatpush.msrb.mxu0 %v1790_v3  ;;  %v1841_v2 = vld [vmem:[%s3000_s2 + $0x2e0] sm:$0xff] }
  0x49   : > { %520 = vmatpush.msrb.mxu1 %v415_v4  ;;  %493 = vmatmul.f32.gmra.mxu2 %v2319_v5  ;;  %v1809_v3 = vld [vmem:[%s3000_s2 + $0x3e0] sm:$0xff]  ;;  %v1859_v4 = vld [vmem:[%s3000_s2 + $0x470] sm:$0xff] }
  0x4a   : > { %481 = vmatmul.f32.gmra.mxu1 %v2322_v6  ;;  %603 = vmatpush.msrb.mxu2 %v1752_v7  ;;  %v1824_v7 = vld [vmem:[%s3000_s2 + $0x158] sm:$0xff] }
  0x4b   : > { %801 = vmatpush.msrb.mxu3 %v1769_v8  ;;  %895 = vmatpush.msrb.mxu0 %v1789_v9  ;;  %v711_v8 = vrot.slane %v2456_v0, 1  ;;  %v1840_v9 = vld [vmem:[%s3000_s2 + $0x2d8] sm:$0xff] }
  0x4c   : > { %521 = vmatpush.msrb.mxu1 %v414_v10  ;;  %466 = vmatmul.f32.gmra.mxu0 %v2338_v11  ;;  %v1808_v10 = vld [vmem:[%s3000_s2 + $0x3d8] sm:$0xff] }
  0x4d   : > { %505 = vmatmul.f32.gmra.mxu3 %v2342_v12  ;;  %604 = vmatpush.msrb.mxu2 %v1751_v13  ;;  %v1858_v13 = vld [vmem:[%s3000_s2 + $0x468] sm:$0xff] }
  0x4e   : > { %802 = vmatpush.msrb.mxu3 %v1768_v14  ;;  %896 = vmatpush.msrb.mxu0 %v1788_v15  ;;  %v1823_v14 = vld [vmem:[%s3000_s2 + $0x150] sm:$0xff]  ;;  %v1857_v15 = vld [vmem:[%s3000_s2 + $0x460] sm:$0xff] }
  0x4f   : > { %522 = vmatpush.msrb.mxu1 %v413_v18  ;;  %605 = vmatpush.msrb.mxu2 %v1750_v19  ;;  %v1839_v18 = vld [vmem:[%s3000_s2 + $0x2d0] sm:$0xff]  ;;  %v712_v19 = vsel %vm702_vm0, %v709_v52, %v711_v8  ;;  %v719_v52 = vrot.slane %v2193_v32, 1 }
  0x50   : > { %803 = vmatpush.msrb.mxu3 %v1767_v23  ;;  %897 = vmatpush.msrb.mxu0 %v1787_v24  ;;  %v1856_v23 = vld [vmem:[%s3000_s2 + $0x458] sm:$0xff]  ;;  %v1807_v24 = vld [vmem:[%s3000_s2 + $0x3d0] sm:$0xff] }
  0x51   : > { %523 = vmatpush.msrb.mxu1 %v412_v25  ;;  %606 = vmatpush.msrb.mxu2 %v1749_v26  ;;  %v1822_v25 = vld [vmem:[%s3000_s2 + $0x148] sm:$0xff] }
  0x52   : > { %804 = vmatpush.msrb.mxu3 %v1766_v28  ;;  %898 = vmatpush.msrb.mxu0 %v1786_v29  ;;  %v1838_v26 = vld [vmem:[%s3000_s2 + $0x2c8] sm:$0xff]  ;;  %v1855_v28 = vld [vmem:[%s3000_s2 + $0x450] sm:$0xff] }
  0x53   : > { %524 = vmatpush.msrb.mxu1 %v411_v34  ;;  %607 = vmatmul.f32.vlgmr.msrb.gmra.mxu2 %v2338_v11  ;;  %v1806_v29 = vld [vmem:[%s3000_s2 + $0x3c8] sm:$0xff]  ;;  %v2517_v34 = vsel %vm702_vm0, %v713_v30, %v714_v33 }
  0x54   : > { %525 = vmatmul.f32.vlgmr.msrb.gmra.mxu1 %v2361_v21  ;;  %805 = vmatpush.msrb.mxu3 %v1765_v35  ;;  %v2521_v35 = vld [vmem:[%s2126_s24 + $0x40] sm:$0x3] }
  0x55   : > { %899 = vmatpush.msrb.mxu0 %v1785_v37  ;;  %1155 = vmatpush.msra.mxu2 %v1828_v38  ;;  %v1821_v37 = vld [vmem:[%s3000_s2 + $0x140] sm:$0xff] }
  0x56   : > { %469 = vmatmul.f32.gmra.mxu0 %v2401_v39  ;;  %806 = vmatmul.f32.vlgmr.msrb.gmra.mxu3 %v705_v40  ;;  %v1837_v38 = vld [vmem:[%s3000_s2 + $0x2c0] sm:$0xff]  ;;  %v1854_v40 = vld [vmem:[%s3000_s2 + $0x448] sm:$0xff] }
  0x57   : > { %900 = vmatpush.msrb.mxu0 %v1784_v41  ;;  %1253 = vmatpush.msra.mxu3 %v1844_v42  ;;  %v1805_v41 = vld [vmem:[%s3000_s2 + $0x3c0] sm:$0xff]  ;;  %v716_v42 = vrot.slane %v2521_v35, 1 }
  0x58   : > { %986 = vmatpush.msra.mxu1 %v1812_v44  ;;  %1156 = vmatpush.msra.mxu2 %v1827_v45  ;;  %v1820_v45 = vld [vmem:[%s3000_s2 + $0x138] sm:$0xff] }
  0x59   : > { %901 = vmatpush.msrb.mxu0 %v1783_v46  ;;  %1254 = vmatpush.msra.mxu3 %v1843_v47  ;;  %v2539_v44 = vsel %vm702_vm0, %v714_v33, %v716_v42  ;;  %v1836_v46 = vld [vmem:[%s3000_s2 + $0x2b8] sm:$0xff]  ;;  %v1853_v47 = vld [vmem:[%s3000_s2 + $0x440] sm:$0xff]  ;;  %v2652_v33 = vld [vmem:[%s2126_s24 + $0x88] sm:$0x3] }
  0x5a   : > { %987 = vmatpush.msra.mxu1 %v1811_v53  ;;  %1157 = vmatpush.msra.mxu2 %v1826_v54  ;;  %v2560_v53 = vsel %vm702_vm0, %v718_v51, %v719_v52  ;;  %v2564_v54 = vld [vmem:[%s2126_s24 + $0x58] sm:$0x3]  ;;  %v731_v42 = vrot.slane %v2652_v33, 1  ;;  %v733_v51 = vrot.slane %v2250_v49, 1 }
  0x5b   : > { %902 = vmatpush.msrb.mxu0 %v1782_v57  ;;  %610 = vmatmul.f32.gmra.mxu2 %v2401_v39  ;;  %v1819_v57 = vld [vmem:[%s3000_s2 + $0x130] sm:$0xff] }
  0x5c   : > { %528 = vmatmul.f32.gmra.mxu1 %v2364_v22  ;;  %1255 = vmatpush.msra.mxu3 %v1842_v58  ;;  %v1835_v58 = vld [vmem:[%s3000_s2 + $0x2b0] sm:$0xff] }
  0x5d   : > { %903 = vmatpush.msrb.mxu0 %v1781_v59  ;;  %988 = vmatpush.msra.mxu1 %v1810_v60  ;;  %v1852_v59 = vld [vmem:[%s3000_s2 + $0x438] sm:$0xff]  ;;  %v1803_v60 = vld [vmem:[%s3000_s2 + $0x3b0] sm:$0xff] }
  0x5e   : > { %809 = vmatmul.f32.gmra.mxu3 %v707_v61  ;;  %904 = vmatmul.f32.vlgmr.msrb.gmra.mxu0 %v710_v62  ;;  %v721_v61 = vrot.slane %v2564_v54, 1 }
  0x5f   : > { %1351 = vmatpush.msra.mxu0 %v1860_v63  ;;  %1158 = vmatpush.msra.mxu2 %v1825_v1  ;;  %v1818_v63 = vld [vmem:[%s3000_s2 + $0x128] sm:$0xff] }
  0x60   : > { %1256 = vmatpush.msra.mxu3 %v1841_v2  ;;  %989 = vmatpush.msra.mxu1 %v1809_v3  ;;  %v1834_v1 = vld [vmem:[%s3000_s2 + $0x2a8] sm:$0xff]  ;;  %v1851_v2 = vld [vmem:[%s3000_s2 + $0x430] sm:$0xff] }
  0x61   : > { %1352 = vmatpush.msra.mxu0 %v1859_v4  ;;  %1159 = vmatpush.msra.mxu2 %v1824_v7  ;;  %v1802_v3 = vld [vmem:[%s3000_s2 + $0x3a8] sm:$0xff]  ;;  %v723_v4 = vrot.slane %v2253_v50, 1  ;;  %v724_v7 = vrot.slane %v2322_v6, 1 }
  0x62   : > { %1257 = vmatpush.msra.mxu3 %v1840_v9  ;;  %990 = vmatpush.msra.mxu1 %v1808_v10  ;;  %v2608_v9 = vld [vmem:[%s2126_s24 + $0x70] sm:$0x3]  ;;  %v1817_v10 = vld [vmem:[%s3000_s2 + $0x120] sm:$0xff] }
  0x63   : > { %613 = vmatmul.f32.gmra.mxu2 %v2133_v16  ;;  %1353 = vmatpush.msra.mxu0 %v1858_v13  ;;  %v2604_v8 = vsel %vm702_vm0, %v723_v4, %v724_v7  ;;  %v1833_v13 = vld [vmem:[%s3000_s2 + $0x2a0] sm:$0xff] }
  0x64   : > { %531 = vmatmul.f32.gmra.mxu1 %v2177_v27  ;;  %1160 = vmatpush.msra.mxu2 %v1823_v14  ;;  %v1850_v14 = vld [vmem:[%s3000_s2 + $0x428] sm:$0xff] }
  0x65   : > { %1354 = vmatpush.msra.mxu0 %v1857_v15  ;;  %1258 = vmatpush.msra.mxu3 %v1839_v18  ;;  %v1801_v15 = vld [vmem:[%s3000_s2 + $0x3a0] sm:$0xff]  ;;  %v726_v18 = vrot.slane %v2608_v9, 1 }
  0x66   : > { %812 = vmatmul.f32.gmra.mxu3 %v710_v62  ;;  %907 = vmatmul.f32.gmra.mxu0 %v712_v19  ;;  %v2583_v62 = vsel %vm702_vm0, %v719_v52, %v721_v61  ;;  %v734_v52 = vrot.slane %v2319_v5, 1  ;;  %v1829_v61 = vld [vmem:[%s3000_s2 + $0x280] sm:$0xff] }
  0x67   : > { %1355 = vmatpush.msra.mxu0 %v1856_v23  ;;  %991 = vmatpush.msra.mxu1 %v1807_v24  ;;  %v1816_v23 = vld [vmem:[%s3000_s2 + $0x118] sm:$0xff] }
  0x68   : > { %1161 = vmatpush.msra.mxu2 %v1822_v25  ;;  %1259 = vmatpush.msra.mxu3 %v1838_v26  ;;  %v1832_v24 = vld [vmem:[%s3000_s2 + $0x298] sm:$0xff]  ;;  %v1849_v25 = vld [vmem:[%s3000_s2 + $0x420] sm:$0xff] }
  0x69   : > { %1356 = vmatpush.msra.mxu0 %v1855_v28  ;;  %992 = vmatpush.msra.mxu1 %v1806_v29  ;;  %v1800_v26 = vld [vmem:[%s3000_s2 + $0x398] sm:$0xff]  ;;  %v728_v28 = vrot.slane %v2136_v17, 1  ;;  %v729_v29 = vrot.slane %v2189_v31, 1 }
  0x6a   : > { %1162 = vmatpush.msra.mxu2 %v1821_v37  ;;  %1260 = vmatpush.msra.mxu3 %v1837_v38  ;;  %v1815_v37 = vld [vmem:[%s3000_s2 + $0x110] sm:$0xff] }
  0x6b   : > { %616 = vmatmul.f32.gmra.mxu2 %v2193_v32  ;;  %1357 = vmatpush.msra.mxu0 %v1854_v40  ;;  %v2648_v30 = vsel %vm702_vm0, %v728_v28, %v729_v29  ;;  %v1831_v38 = vld [vmem:[%s3000_s2 + $0x290] sm:$0xff]  ;;  %v1848_v40 = vld [vmem:[%s3000_s2 + $0x418] sm:$0xff] }
  0x6c   : > { %534 = vmatmul.f32.gmra.mxu1 %v2274_v55  ;;  %1163 = vmatpush.msra.mxu2 %v1820_v45  ;;  %v2671_v45 = vsel %vm702_vm0, %v729_v29, %v731_v42 }
  0x6d   : > { %993 = vmatpush.msra.mxu1 %v1805_v41  ;;  %1261 = vmatpush.msra.mxu3 %v1836_v46  ;;  %v1799_v41 = vld [vmem:[%s3000_s2 + $0x390] sm:$0xff]  ;;  %v1814_v46 = vld [vmem:[%s3000_s2 + $0x108] sm:$0xff] }
  0x6e   : > { %815 = vmatmul.f32.gmra.mxu3 %v712_v19  ;;  %910 = vmatmul.f32.gmra.mxu0 %v2517_v34  ;;  %v2627_v19 = vsel %vm702_vm0, %v724_v7, %v726_v18  ;;  %v739_v18 = vrot.slane %v2207_v36, 1 }
  0x6f   : > { %1358 = vmatpush.msra.mxu0 %v1853_v47  ;;  %994 = vmatpush.msra.mxu1 %v1804_v48  ;;  %v1830_v47 = vld [vmem:[%s3000_s2 + $0x288] sm:$0xff]  ;;  %v1847_v48 = vld [vmem:[%s3000_s2 + $0x410] sm:$0xff] }
  0x70   : > { %1164 = vmatpush.msra.mxu2 %v1819_v57  ;;  %1262 = vmatpush.msra.mxu3 %v1835_v58  ;;  %v2692_v57 = vsel %vm702_vm0, %v733_v51, %v734_v52 }
  0x71   : > { %1359 = vmatpush.msra.mxu0 %v1852_v59  ;;  %995 = vmatpush.msra.mxu1 %v1803_v60  ;;  %v2698_v59 = vld [vmem:[%s2126_s24 + $0xa0] sm:$0x3] }
  0x72   : > { %1165 = vmatpush.msra.mxu2 %v1818_v63  ;;  %1263 = vmatpush.msra.mxu3 %v1834_v1  ;;  %v1813_v60 = vld [vmem:[%s3000_s2 + $0x100] sm:$0xff]  ;;  %v1846_v63 = vld [vmem:[%s3000_s2 + $0x408] sm:$0xff] }
  0x73   : > { %619 = vmatmul.f32.gmra.mxu2 %v2253_v50  ;;  %1360 = vmatpush.msra.mxu0 %v1851_v2  ;;  %v1797_v1 = vld [vmem:[%s3000_s2 + $0x380] sm:$0xff]  ;;  %v736_v2 = vrot.slane %v2698_v59, 1 }
  0x74   : > { %537 = vmatmul.f32.gmra.mxu1 %v2338_v11  ;;  %1166 = vmatpush.msra.mxu2 %v1817_v10 }
  0x75   : > { %996 = vmatpush.msra.mxu1 %v1802_v3  ;;  %1264 = vmatpush.msra.mxu3 %v1833_v13  ;;  %v2719_v4 = vsel %vm702_vm0, %v734_v52, %v736_v2 }
  0x76   : > { %818 = vmatmul.f32.gmra.mxu3 %v2517_v34  ;;  %913 = vmatmul.f32.gmra.mxu0 %v2539_v44 }
  0x77   : > { %1361 = vmatpush.msra.mxu0 %v1850_v14  ;;  %997 = vmatpush.msra.mxu1 %v1801_v15  ;;  %v1845_v14 = vld [vmem:[%s3000_s2 + $0x400] sm:$0xff]  ;;  %v738_v15 = vrot.slane %v2149_v20, 1 }
  0x78   : > { %1167 = vmatpush.msra.mxu2 %v1816_v23  ;;  %1265 = vmatpush.msra.mxu3 %v1832_v24 }
  0x79   : > { %1362 = vmatpush.msra.mxu0 %v1849_v25  ;;  %998 = vmatpush.msra.mxu1 %v1800_v26  ;;  %v2737_v24 = vsel %vm702_vm0, %v738_v15, %v739_v18  ;;  %v2743_v26 = vld [vmem:[%s2126_s24 + $0xb8] sm:$0x3] }
  0x7a   : > { %1168 = vmatpush.msra.mxu2 %v1815_v37  ;;  %1266 = vmatpush.msra.mxu3 %v1831_v38  ;;  %v741_v37 = vrot.slane %v2743_v26, 1  ;;  %v2751_v38 = vld [vmem:[%s2261_s26 + $0x18] sm:$0xff] }
  0x7b   : > { %622 = vmatmul.f32.gmra.mxu2 %v2322_v6  ;;  %1363 = vmatpush.msra.mxu0 %v1848_v40 }
  0x7c   : > { %540 = vmatmul.f32.gmra.mxu1 %v2401_v39  ;;  %1169 = vmatpush.msra.mxu2 %v1814_v46 }
  0x7d   : > { %999 = vmatpush.msra.mxu1 %v1799_v41  ;;  %1267 = vmatpush.msra.mxu3 %v1830_v47  ;;  %v2757_v41 = vsel %vm702_vm0, %v739_v18, %v741_v37  ;;  %v743_v47 = vrot.slane %v2278_v56, 1 }
  0x7e   : > { %821 = vmatmul.f32.gmra.mxu3 %v2539_v44  ;;  %916 = vmatmul.f32.gmra.mxu0 %v2560_v53 }
  0x7f   : > { %1364 = vmatpush.msra.mxu0 %v1847_v48  ;;  %1170 = vmatpush.msra.mxu2 %v1813_v60  ;;  %v744_v48 = vrot.slane %v2342_v12, 1 }
  0x80   : > { %1268 = vmatpush.msra.mxu3 %v1829_v61  ;;  %v1069_v61 = vrot.slane %v2364_v22, 2 }
  0x81   : > { %1365 = vmatpush.msra.mxu0 %v1846_v63  ;;  %v2773_v52 = vsel %vm702_vm0, %v743_v47, %v744_v48  ;;  %v2781_v63 = vld [vmem:[%s2261_s26 + $0x10] sm:$0x3] }
  0x82   : > { %v746_v2 = vrot.slane %v2781_v63, 1 }
  0x83   : > { %625 = vmatmul.f32.gmra.mxu2 %v2136_v17  ;;  %1366 = vmatpush.msra.mxu0 %v1845_v14 }
  0x84   : > { %543 = vmatmul.f32.gmra.mxu1 %v2133_v16  ;;  %v2792_v22 = vsel %vm702_vm0, %v744_v48, %v746_v2 }
  0x86   : > { %824 = vmatmul.f32.gmra.mxu3 %v2560_v53  ;;  %919 = vmatmul.f32.gmra.mxu0 %v2583_v62 }
  0x8b   : > { %628 = vmatmul.f32.gmra.mxu2 %v2189_v31 }
  0x8c   : > { %546 = vmatmul.f32.gmra.mxu1 %v2193_v32 }
  0x8e   : > { %827 = vmatmul.f32.gmra.mxu3 %v2583_v62  ;;  %922 = vmatmul.f32.gmra.mxu0 %v2604_v8 }
  0x93   : > { %631 = vmatmul.f32.gmra.mxu2 %v2250_v49 }
  0x94   : > { %549 = vmatmul.f32.gmra.mxu1 %v2253_v50 }
  0x96   : > { %830 = vmatmul.f32.gmra.mxu3 %v2604_v8  ;;  %925 = vmatmul.f32.gmra.mxu0 %v2627_v19 }
  0x9b   : > { %634 = vmatmul.f32.gmra.mxu2 %v2319_v5 }
  0x9c   : > { %552 = vmatmul.f32.gmra.mxu1 %v2322_v6 }
  0x9e   : > { %833 = vmatmul.f32.gmra.mxu3 %v2627_v19  ;;  %928 = vmatmul.f32.gmra.mxu0 %v2648_v30 }
  0xa3   : > { %637 = vmatmul.f32.gmra.mxu2 %v2149_v20 }
  0xa4   : > { %555 = vmatmul.f32.gmra.mxu1 %v2136_v17  ;;  %v1798_v17 = vld [vmem:[%s3000_s2 + $0x388] sm:$0xff] }
  0xa5   : > { %1000 = vmatpush.msra.mxu1 %v1798_v17  ;;  %v2769_v17 = vld [vmem:[%s2261_s26 + $0x20] sm:$0xff] }
  0xa6   : > { %836 = vmatmul.f32.gmra.mxu3 %v2648_v30  ;;  %931 = vmatmul.f32.gmra.mxu0 %v2671_v45 }
  0xa7   : > { %1001 = vmatpush.msra.mxu1 %v1797_v1  ;;  %v1074_v1 = vrot.slane %v2274_v55, 2 }
  0xab   : > { %640 = vmatmul.f32.gmra.mxu2 %v2207_v36  ;;  %v2694_v58 = vpop.f32.mrf.mxu1 }
  0xac   : > { %558 = vmatmul.f32.gmra.mxu1 %v2189_v31 }
  0xae   : > { %839 = vmatmul.f32.gmra.mxu3 %v2671_v45  ;;  %934 = vmatmul.f32.gmra.mxu0 %v2692_v57 }
  0xb1   : > { %v2715_v3 = vpop.f32.mrf.mxu2  ;;  %v461_v13 = vpop.f32.mrf.mxu0 }
  0xb3   : > { %643 = vmatmul.f32.gmra.mxu2 %v2278_v56  ;;  %v2721_v7 = vpop.f32.mrf.mxu3  ;;  %v1073_v56 = vrot.slane %v2177_v27, 2  ;;  %v1071_v27 = vrot.slane %v2412_v43, 2 }
  0xb4   : > { %561 = vmatmul.f32.gmra.mxu1 %v2250_v49  ;;  %v2724_v10 = vpop.f32.mrf.mxu1 }
  0xb5   : > { %v1075_v18 = vsel %vm1067_vm1, %v1073_v56, %v1074_v1  ;;  %v1072_v48 = vsel %vm1067_vm1, %v1069_v61, %v1071_v27 }
  0xb6   : > { %842 = vmatmul.f32.gmra.mxu3 %v2692_v57  ;;  %937 = vmatmul.f32.gmra.mxu0 %v2719_v4 }
  0xb9   : > { %v2733_v23 = vpop.f32.mrf.mxu2 }
  0xbb   : > { %646 = vmatmul.f32.gmra.mxu2 %v2342_v12 }
  0xbc   : > { %564 = vmatmul.f32.gmra.mxu1 %v2319_v5  ;;  %v2740_v25 = vpop.f32.mrf.mxu3 }
  0xbd   : > { %v2745_v28 = vpop.f32.mrf.mxu1 }
  0xbe   : > { %845 = vmatmul.f32.gmra.mxu3 %v2719_v4  ;;  %940 = vmatmul.f32.gmra.mxu0 %v2737_v24 }
  0xbf   : > { %v464_v29 = vpop.f32.mrf.mxu0 }
  0xc2   : > { %v2753_v40 = vpop.f32.mrf.mxu2 }
  0xc3   : > { %649 = vmatmul.f32.gmra.mxu2 %v2751_v38 }
  0xc4   : > { %567 = vmatmul.f32.gmra.mxu1 %v2149_v20  ;;  %v1068_v20 = vrot.slane %v2361_v21, 2 }
  0xc6   : > { %848 = vmatmul.f32.gmra.mxu3 %v2737_v24  ;;  %943 = vmatmul.f32.gmra.mxu0 %v2757_v41  ;;  %v2762_v42 = vpop.f32.mrf.mxu3 }
  0xc7   : > { %3004 = vst [vmem:[#allocation2_spill] sm:$0xff] %v2762_v42  ;;  %v2764_v46 = vpop.f32.mrf.mxu1 }
  0xc9   : > { %v467_v51 = vpop.f32.mrf.mxu0 }
  0xcb   : > { %652 = vmatmul.f32.gmra.mxu2 %v2769_v17 }
  0xcc   : > { %570 = vmatmul.f32.gmra.mxu1 %v2207_v36  ;;  %v2777_v60 = vpop.f32.mrf.mxu2  ;;  %v1070_v36 = vsel %vm1067_vm1, %v1068_v20, %v1069_v61  ;;  %v1076_v20 = vrot.slane %v2456_v0, 2  ;;  %v1081_v61 = vrot.slane %v2521_v35, 2  ;;  %v1084_v35 = vrot.slane %v2193_v32, 2 }
  0xce   : > { %851 = vmatmul.f32.gmra.mxu3 %v2757_v41  ;;  %946 = vmatmul.f32.gmra.mxu0 %v2773_v52  ;;  %v1077_v43 = vsel %vm1067_vm1, %v1074_v1, %v1076_v20 }
  0xd0   : > { %v2788_v21 = vpop.f32.mrf.mxu3 }
  0xd1   : > { %3005 = vst [vmem:[#allocation3_spill] sm:$0xff] %v2788_v21  ;;  %v526_v14 = vpop.f32.mrf.mxu1  ;;  %v1078_v21 = vrot.slane %v2338_v11, 2 }
  0xd2   : > { %v527_v37 = vadd.f32 %v526_v14, %v461_v13 }
  0xd3   : > { %v470_v15 = vpop.f32.mrf.mxu0  ;;  %1171 = vmatmul.f32.vlgmr.msra.gmra.mxu2 %v1070_v36  ;;  %v1079_v36 = vrot.slane %v2401_v39, 2 }
  0xd4   : > { %1002 = vmatmul.f32.vlgmr.msra.gmra.mxu1 %v2517_v34 }
  0xd5   : > { %v1080_v13 = vsel %vm1067_vm1, %v1078_v21, %v1079_v36  ;;  %v1082_v1 = vsel %vm1067_vm1, %v1079_v36, %v1081_v61 }
  0xd6   : > { %949 = vmatmul.f32.gmra.mxu0 %v2792_v22  ;;  %1269 = vmatmul.f32.vlgmr.msra.gmra.mxu3 %v1075_v18  ;;  %v608_v55 = vpop.f32.mrf.mxu2 }
  0xd7   : > { %v656_v47 = vadd.f32 %v608_v55, %v527_v37 }
  0xd9   : > { %v529_v2 = vpop.f32.mrf.mxu1  ;;  %v807_v56 = vpop.f32.mrf.mxu3 }
  0xda   : > { %v2802_v42 = vadd.f32 %v807_v56, %v656_v47  ;;  %v530_v0 = vadd.f32 %v529_v2, %v464_v29  ;;  %v1083_v47 = vrot.slane %v2133_v16, 2  ;;  %v1086_v16 = vrot.slane %v2564_v54, 2 }
  0xdb   : > { %v2804_v34 = vpop.f32.mrf.mxu0  ;;  %1174 = vmatmul.f32.gmra.mxu2 %v1072_v48  ;;  %v1089_v54 = vrot.slane %v2322_v6, 2  ;;  %v1091_v6 = vrot.slane %v2608_v9, 2  ;;  %v1094_v9 = vrot.slane %v2189_v31, 2 }
  0xdc   : > { %1005 = vmatmul.f32.gmra.mxu1 %v2539_v44 }
  0xde   : > { %1272 = vmatmul.f32.gmra.mxu3 %v1077_v43  ;;  %1367 = vmatmul.f32.vlgmr.msra.gmra.mxu0 %v1080_v13  ;;  %v611_v11 = vpop.f32.mrf.mxu2 }
  0xdf   : > { %v657_v39 = vadd.f32 %v611_v11, %v530_v0 }
  0xe1   : > { %v532_v14 = vpop.f32.mrf.mxu1  ;;  %v810_v27 = vpop.f32.mrf.mxu3 }
  0xe2   : > { %v2810_v37 = vadd.f32 %v810_v27, %v657_v39  ;;  %v533_v21 = vadd.f32 %v532_v14, %v467_v51  ;;  %v1088_v14 = vrot.slane %v2253_v50, 2 }
  0xe3   : > { %v2812_v55 = vpop.f32.mrf.mxu0  ;;  %1177 = vmatmul.f32.gmra.mxu2 %v1075_v18  ;;  %v1085_v18 = vsel %vm1067_vm1, %v1083_v47, %v1084_v35 }
  0xe4   : > { %1008 = vmatmul.f32.gmra.mxu1 %v2560_v53 }
  0xe6   : > { %1275 = vmatmul.f32.gmra.mxu3 %v1080_v13  ;;  %1370 = vmatmul.f32.gmra.mxu0 %v1082_v1  ;;  %v614_v44 = vpop.f32.mrf.mxu2 }
  0xe7   : > { %v658_v29 = vadd.f32 %v614_v44, %v533_v21 }
  0xe9   : > { %v535_v20 = vpop.f32.mrf.mxu1  ;;  %v813_v48 = vpop.f32.mrf.mxu3 }
  0xea   : > { %v2818_v2 = vadd.f32 %v813_v48, %v658_v29  ;;  %v536_v53 = vadd.f32 %v535_v20, %v470_v15 }
  0xeb   : > { %v2820_v56 = vpop.f32.mrf.mxu0  ;;  %1180 = vmatmul.f32.gmra.mxu2 %v1077_v43  ;;  %v1087_v43 = vsel %vm1067_vm1, %v1084_v35, %v1086_v16 }
  0xec   : > { %1011 = vmatmul.f32.gmra.mxu1 %v2583_v62 }
  0xee   : > { %1278 = vmatmul.f32.gmra.mxu3 %v1082_v1  ;;  %1373 = vmatmul.f32.gmra.mxu0 %v1085_v18  ;;  %v617_v51 = vpop.f32.mrf.mxu2 }
  0xef   : > { %v659_v36 = vadd.f32 %v617_v51, %v536_v53  ;;  %v1963_v51 = vld [vmem:[%s2126_s24 + $0x78] sm:$0xff] }
  0xf1   : > { %v538_v0 = vpop.f32.mrf.mxu1  ;;  %v816_v32 = vpop.f32.mrf.mxu3 }
  0xf2   : > { %v2825_v11 = vadd.f32 %v816_v32, %v659_v36  ;;  %v539_v62 = vadd.f32 %v538_v0, %v2694_v58  ;;  %v1093_v36 = vrot.slane %v1963_v51, 2 }
  0xf3   : > { %v2827_v39 = vpop.f32.mrf.mxu0  ;;  %1183 = vmatmul.f32.gmra.mxu2 %v1080_v13  ;;  %v1090_v13 = vsel %vm1067_vm1, %v1088_v14, %v1089_v54 }
  0xf4   : > { %1014 = vmatmul.f32.gmra.mxu1 %v2604_v8 }
  0xf6   : > { %1281 = vmatmul.f32.gmra.mxu3 %v1085_v18  ;;  %1376 = vmatmul.f32.gmra.mxu0 %v1087_v43  ;;  %v620_v15 = vpop.f32.mrf.mxu2 }
  0xf7   : > { %v660_v61 = vadd.f32 %v620_v15, %v539_v62 }
  0xf9   : > { %v541_v27 = vpop.f32.mrf.mxu1  ;;  %v819_v21 = vpop.f32.mrf.mxu3 }
  0xfa   : > { %v2834_v44 = vadd.f32 %v819_v21, %v660_v61  ;;  %v542_v8 = vadd.f32 %v541_v27, %v2724_v10  ;;  %v1096_v61 = vrot.slane %v2652_v33, 2  ;;  %v1099_v33 = vrot.slane %v2319_v5, 2 }
  0xfb   : > { %v2836_v29 = vpop.f32.mrf.mxu0  ;;  %1186 = vmatmul.f32.gmra.mxu2 %v1082_v1  ;;  %v1092_v1 = vsel %vm1067_vm1, %v1089_v54, %v1091_v6  ;;  %v749_v5 = vrot.slane %v2769_v17, 1 }
  0xfc   : > { %1017 = vmatmul.f32.gmra.mxu1 %v2627_v19 }
  0xfe   : > { %1284 = vmatmul.f32.gmra.mxu3 %v1087_v43  ;;  %1379 = vmatmul.f32.gmra.mxu0 %v1090_v13  ;;  %v623_v58 = vpop.f32.mrf.mxu2 }
  0xff   : > { %v661_v50 = vadd.f32 %v623_v58, %v542_v8  ;;  %v1098_v8 = vrot.slane %v2250_v49, 2  ;;  %v748_v49 = vrot.slane %v2751_v38, 1 }
 0x101   : > { %v544_v47 = vpop.f32.mrf.mxu1  ;;  %v822_v35 = vpop.f32.mrf.mxu3 }
 0x102   : > { %v2842_v20 = vadd.f32 %v822_v35, %v661_v50  ;;  %v545_v19 = vadd.f32 %v544_v47, %v2745_v28 }
 0x103   : > { %v2844_v48 = vpop.f32.mrf.mxu0  ;;  %1189 = vmatmul.f32.gmra.mxu2 %v1085_v18  ;;  %v1095_v18 = vsel %vm1067_vm1, %v1093_v36, %v1094_v9 }
 0x104   : > { %1020 = vmatmul.f32.gmra.mxu1 %v2648_v30 }
 0x106   : > { %1287 = vmatmul.f32.gmra.mxu3 %v1090_v13  ;;  %1382 = vmatmul.f32.gmra.mxu0 %v1092_v1  ;;  %v626_v10 = vpop.f32.mrf.mxu2 }
 0x107   : > { %v662_v53 = vadd.f32 %v626_v10, %v545_v19  ;;  %v1101_v10 = vrot.slane %v2698_v59, 2 }
 0x109   : > { %v547_v16 = vpop.f32.mrf.mxu1  ;;  %v825_v0 = vpop.f32.mrf.mxu3 }
 0x10a   : > { %v2851_v32 = vadd.f32 %v825_v0, %v662_v53  ;;  %v548_v30 = vadd.f32 %v547_v16, %v2764_v46 }
 0x10b   : > { %v2853_v62 = vpop.f32.mrf.mxu0  ;;  %1192 = vmatmul.f32.gmra.mxu2 %v1087_v43  ;;  %v1097_v43 = vsel %vm1067_vm1, %v1094_v9, %v1096_v61  ;;  %v1113_v61 = vrot.slane %v2751_v38, 2 }
 0x10c   : > { %1023 = vmatmul.f32.gmra.mxu1 %v2671_v45 }
 0x10e   : > { %1290 = vmatmul.f32.gmra.mxu3 %v1092_v1  ;;  %1385 = vmatmul.f32.gmra.mxu0 %v1095_v18  ;;  %v629_v28 = vpop.f32.mrf.mxu2 }
 0x10f   : > { %v663_v15 = vadd.f32 %v629_v28, %v548_v30  ;;  %v1964_v30 = vld [vmem:[%s2126_s24 + $0xa8] sm:$0xff] }
 0x110   : > { %v1103_v28 = vrot.slane %v1964_v30, 2 }
 0x111   : > { %v550_v31 = vpop.f32.mrf.mxu1  ;;  %v828_v14 = vpop.f32.mrf.mxu3 }
 0x112   : > { %v2859_v54 = vadd.f32 %v828_v14, %v663_v15  ;;  %v551_v45 = vadd.f32 %v550_v31, %v2715_v3  ;;  %v1114_v31 = vrot.slane %v2769_v17, 2 }
 0x113   : > { %v2861_v27 = vpop.f32.mrf.mxu0  ;;  %1195 = vmatmul.f32.gmra.mxu2 %v1090_v13  ;;  %v1100_v13 = vsel %vm1067_vm1, %v1098_v8, %v1099_v33 }
 0x114   : > { %1026 = vmatmul.f32.gmra.mxu1 %v2692_v57 }
 0x116   : > { %1293 = vmatmul.f32.gmra.mxu3 %v1095_v18  ;;  %1388 = vmatmul.f32.gmra.mxu0 %v1097_v43  ;;  %v632_v46 = vpop.f32.mrf.mxu2 }
 0x117   : > { %v664_v21 = vadd.f32 %v632_v46, %v551_v45 }
 0x119   : > { %v553_v58 = vpop.f32.mrf.mxu1  ;;  %v831_v50 = vpop.f32.mrf.mxu3 }
 0x11a   : > { %v863_v6 = vadd.f32 %v831_v50, %v664_v21  ;;  %v554_v57 = vadd.f32 %v553_v58, %v2733_v23  ;;  %v2880_v23 = vsel %vm702_vm0, %v748_v49, %v749_v5  ;;  %v1106_v50 = vrot.slane %v2743_v26, 2 }
 0x11b   : > { %v929_v47 = vpop.f32.mrf.mxu0  ;;  %1198 = vmatmul.f32.gmra.mxu2 %v1092_v1  ;;  %v1109_v26 = vrot.slane %v2342_v12, 2  ;;  %v1111_v12 = vrot.slane %v2781_v63, 2 }
 0x11c   : > { %v2869_v35 = vadd.f32 %v929_v47, %v863_v6  ;;  %1029 = vmatmul.f32.gmra.mxu1 %v2719_v4  ;;  %v1102_v4 = vsel %vm1067_vm1, %v1099_v33, %v1101_v10  ;;  %v1115_v33 = vsel %vm1067_vm1, %v1113_v61, %v1114_v31  ;;  %v1966_v10 = vld [vmem:[%s2261_s26] sm:$0xff] }
 0x11d   : > { %v1112_v61 = vsel %vm1067_vm1, %v1109_v26, %v1111_v12 }
 0x11e   : > { %1296 = vmatmul.f32.gmra.mxu3 %v1097_v43  ;;  %1391 = vmatmul.f32.gmra.mxu0 %v1100_v13  ;;  %v635_v3 = vpop.f32.mrf.mxu2 }
 0x11f   : > { %v665_v19 = vadd.f32 %v635_v3, %v554_v57 }
 0x121   : > { %v556_v1 = vpop.f32.mrf.mxu1  ;;  %v834_v53 = vpop.f32.mrf.mxu3 }
 0x122   : > { %v864_v51 = vadd.f32 %v834_v53, %v665_v19  ;;  %v557_v16 = vadd.f32 %v556_v1, %v2753_v40  ;;  %v1108_v1 = vrot.slane %v1966_v10, 2 }
 0x123   : > { %v932_v36 = vpop.f32.mrf.mxu0  ;;  %1201 = vmatmul.f32.gmra.mxu2 %v1095_v18  ;;  %v1965_v18 = vld [vmem:[%s2126_s24 + $0xb0] sm:$0xff]  ;;  %s1728_s24 = sshll.u32 %s3023_s30, 1 }
 0x124   : > { %v2882_v9 = vadd.f32 %v932_v36, %v864_v51  ;;  %1032 = vmatmul.f32.gmra.mxu1 %v2737_v24  ;;  %v1104_v15 = vrot.slane %v1965_v18, 2 }
 0x126   : > { %1299 = vmatmul.f32.gmra.mxu3 %v1100_v13  ;;  %1394 = vmatmul.f32.gmra.mxu0 %v1102_v4  ;;  %v638_v59 = vpop.f32.mrf.mxu2  ;;  %v1105_v24 = vsel %vm1067_vm1, %v1103_v28, %v1104_v15 }
 0x127   : > { %v666_v0 = vadd.f32 %v638_v59, %v557_v16  ;;  %v1110_v16 = vsel %vm1067_vm1, %v1108_v1, %v1109_v26 }
 0x129   : > { %v559_v14 = vpop.f32.mrf.mxu1  ;;  %v837_v45 = vpop.f32.mrf.mxu3 }
 0x12a   : > { %v865_v46 = vadd.f32 %v837_v45, %v666_v0  ;;  %v560_v8 = vadd.f32 %v559_v14, %v2777_v60 }
 0x12b   : > { %v935_v21 = vpop.f32.mrf.mxu0  ;;  %1204 = vmatmul.f32.gmra.mxu2 %v1097_v43 }
 0x12c   : > { %v2891_v40 = vadd.f32 %v935_v21, %v865_v46  ;;  %1035 = vmatmul.f32.gmra.mxu1 %v2757_v41  ;;  %v1107_v41 = vsel %vm1067_vm1, %v1104_v15, %v1106_v50  ;;  %v410_v15 = vld [vmem:[%s2261_s26 + $0x28] sm:$0x3]  ;;  %s1729_s26 = sshll.u32 %s3019_s16, 5 }
 0x12d   : > { %v751_v45 = vrot.slane %v410_v15, 1  ;;  %v3007_v50 = vld [vmem:[#allocation3_spill] sm:$0xff]  ;;  %s366_s10 = sadd.s32 %s1729_s26, %s1728_s24 }
 0x12e   : > { %1302 = vmatmul.f32.gmra.mxu3 %v1102_v4  ;;  %1397 = vmatmul.f32.gmra.mxu0 %v1105_v24  ;;  %v641_v38 = vpop.f32.mrf.mxu2  ;;  %s1730_s12 = sshll.u32 %s366_s10, 3 }
 0x12f   : > { %v667_v58 = vadd.f32 %v641_v38, %v560_v8  ;;  %s2939_s13 = scalar_lea.vmem %s3001_s3, %s1730_s12 }
 0x131   : > { %v562_v43 = vpop.f32.mrf.mxu1  ;;  %v840_v6 = vpop.f32.mrf.mxu3 }
 0x132   : > { %v866_v47 = vadd.f32 %v840_v6, %v667_v58  ;;  %v563_v60 = vadd.f32 %v562_v43, %v2721_v7 }
 0x133   : > { %v938_v57 = vpop.f32.mrf.mxu0  ;;  %1207 = vmatmul.f32.gmra.mxu2 %v1100_v13 }
 0x134   : > { %v2900_v3 = vadd.f32 %v938_v57, %v866_v47  ;;  %1038 = vmatmul.f32.gmra.mxu1 %v2773_v52  ;;  %v1116_v57 = vrot.slane %v410_v15, 2 }
 0x136   : > { %1305 = vmatmul.f32.gmra.mxu3 %v1105_v24  ;;  %1400 = vmatmul.f32.gmra.mxu0 %v1107_v41  ;;  %v644_v49 = vpop.f32.mrf.mxu2  ;;  %v1117_v10 = vsel %vm1067_vm1, %v1114_v31, %v1116_v57 }
 0x137   : > { %v668_v19 = vadd.f32 %v644_v49, %v563_v60 }
 0x139   : > { %v565_v53 = vpop.f32.mrf.mxu1  ;;  %v843_v51 = vpop.f32.mrf.mxu3 }
 0x13a   : > { %v867_v13 = vadd.f32 %v843_v51, %v668_v19  ;;  %v566_v7 = vadd.f32 %v565_v53, %v2740_v25  ;;  %v3006_v25 = vld [vmem:[#allocation2_spill] sm:$0xff] }
 0x13b   : > { %v941_v36 = vpop.f32.mrf.mxu0  ;;  %1210 = vmatmul.f32.gmra.mxu2 %v1102_v4 }
 0x13c   : > { %v2907_v59 = vadd.f32 %v941_v36, %v867_v13  ;;  %1041 = vmatmul.f32.gmra.mxu1 %v2792_v22 }
 0x13e   : > { %1308 = vmatmul.f32.gmra.mxu3 %v1107_v41  ;;  %1403 = vmatmul.f32.gmra.mxu0 %v1110_v16  ;;  %v647_v52 = vpop.f32.mrf.mxu2 }
 0x13f   : > { %v669_v0 = vadd.f32 %v647_v52, %v566_v7 }
 0x141   : > { %v568_v30 = vpop.f32.mrf.mxu1  ;;  %v846_v28 = vpop.f32.mrf.mxu3 }
 0x142   : > { %v868_v18 = vadd.f32 %v846_v28, %v669_v0  ;;  %v569_v22 = vadd.f32 %v568_v30, %v3006_v25  ;;  %v955_v30 = vadd.f32 %v2820_v56, %v2818_v2 }
 0x143   : > { %v944_v4 = vpop.f32.mrf.mxu0  ;;  %1213 = vmatmul.f32.gmra.mxu2 %v1105_v24  ;;  %v752_v24 = vsel %vm702_vm0, %v749_v5, %v751_v45  ;;  %v953_v5 = vadd.f32 %v2804_v34, %v2802_v42 }
 0x144   : > { %v2914_v14 = vadd.f32 %v944_v4, %v868_v18  ;;  %1044 = vmatmul.f32.gmra.mxu1 %v2880_v23 }
 0x146   : > { %1311 = vmatmul.f32.gmra.mxu3 %v1110_v16  ;;  %1406 = vmatmul.f32.gmra.mxu0 %v1112_v61  ;;  %v650_v63 = vpop.f32.mrf.mxu2  ;;  %v954_v16 = vadd.f32 %v2812_v55, %v2810_v37 }
 0x147   : > { %v670_v46 = vadd.f32 %v650_v63, %v569_v22 }
 0x149   : > { %v571_v21 = vpop.f32.mrf.mxu1  ;;  %v849_v8 = vpop.f32.mrf.mxu3 }
 0x14a   : > { %v869_v38 = vadd.f32 %v849_v8, %v670_v46  ;;  %v572_v43 = vadd.f32 %v571_v21, %v3007_v50  ;;  %v956_v21 = vadd.f32 %v2827_v39, %v2825_v11 }
 0x14b   : > { %v947_v58 = vpop.f32.mrf.mxu0  ;;  %1216 = vmatmul.f32.gmra.mxu2 %v1107_v41 }
 0x14c   : > { %v2922_v23 = vadd.f32 %v947_v58, %v869_v38  ;;  %1047 = vmatmul.f32.gmra.mxu1 %v752_v24 }
 0x14e   : > { %1314 = vmatmul.f32.gmra.mxu3 %v1112_v61  ;;  %1409 = vmatmul.f32.gmra.mxu0 %v1115_v33  ;;  %v653_v6 = vpop.f32.mrf.mxu2 }
 0x14f   : > { %v671_v47 = vadd.f32 %v653_v6, %v572_v43 }
 0x151   : > { %v852_v60 = vpop.f32.mrf.mxu3  ;;  %v1003_v49 = vpop.f32.mrf.mxu1 }
 0x152   : > { %v870_v19 = vadd.f32 %v852_v60, %v671_v47  ;;  %v1051_v33 = vadd.f32 %v1003_v49, %v953_v5  ;;  %v957_v60 = vadd.f32 %v2836_v29, %v2834_v44 }
 0x153   : > { %v950_v41 = vpop.f32.mrf.mxu0 }
 0x154   : > { %v2932_v1 = vadd.f32 %v950_v41, %v870_v19 }
 0x156   : > { %1412 = vmatmul.f32.gmra.mxu0 %v1117_v10  ;;  %v1172_v26 = vpop.f32.mrf.mxu2 }
 0x157   : > { %v1220_v53 = vadd.f32 %v1172_v26, %v1051_v33 }
 0x159   : > { %v1006_v51 = vpop.f32.mrf.mxu1  ;;  %v1270_v13 = vpop.f32.mrf.mxu3 }
 0x15a   : > { %v1318_v36 = vadd.f32 %v1270_v13, %v1220_v53  ;;  %v1052_v34 = vadd.f32 %v1006_v51, %v954_v16  ;;  %v958_v13 = vadd.f32 %v2844_v48, %v2842_v20 }
 0x15b   : > { %v1368_v42 = vpop.f32.mrf.mxu0 }
 0x15c   : > { %v1416_v17 = vadd.f32 %v1368_v42, %v1318_v36 }
 0x15e   : > { %1432 = vst [vmem:[%s2939_s13] sm:$0xff] %v1416_v17  ;;  %v1175_v31 = vpop.f32.mrf.mxu2  ;;  %v1469_v18 = vmul.f32 %v1416_v17, %v1416_v17 }
 0x15f   : > { %v1221_v7 = vadd.f32 %v1175_v31, %v1052_v34 }
 0x161   : > { %v1009_v52 = vpop.f32.mrf.mxu1  ;;  %v1273_v0 = vpop.f32.mrf.mxu3 }
 0x162   : > { %v1319_v12 = vadd.f32 %v1273_v0, %v1221_v7  ;;  %v1053_v28 = vadd.f32 %v1009_v52, %v955_v30 }
 0x163   : > { %v1371_v37 = vpop.f32.mrf.mxu0 }
 0x164   : > { %v1417_v55 = vadd.f32 %v1371_v37, %v1319_v12  ;;  %v959_v12 = vadd.f32 %v2853_v62, %v2851_v32 }
 0x166   : > { %1433 = vst [vmem:[%s2939_s13 + $0x8] sm:$0xff] %v1417_v55  ;;  %v1448_v15 = vadd.f32 %v1417_v55, %v1416_v17  ;;  %v1470_v4 = vmul.f32 %v1417_v55, %v1417_v55  ;;  %v1178_v61 = vpop.f32.mrf.mxu2 }
 0x167   : > { %v1222_v25 = vadd.f32 %v1178_v61, %v1053_v28 }
 0x168   : > { %v1485_v22 = vadd.f32 %v1470_v4, %v1469_v18 }
 0x169   : > { %v1012_v45 = vpop.f32.mrf.mxu1  ;;  %v1276_v63 = vpop.f32.mrf.mxu3 }
 0x16a   : > { %v1320_v46 = vadd.f32 %v1276_v63, %v1222_v25  ;;  %v1054_v56 = vadd.f32 %v1012_v45, %v956_v21 }
 0x16b   : > { %v1374_v8 = vpop.f32.mrf.mxu0 }
 0x16c   : > { %v1418_v2 = vadd.f32 %v1374_v8, %v1320_v46 }
 0x16e   : > { %1434 = vst [vmem:[%s2939_s13 + $0x10] sm:$0xff] %v1418_v2  ;;  %v1449_v24 = vadd.f32 %v1448_v15, %v1418_v2  ;;  %v1471_v38 = vmul.f32 %v1418_v2, %v1418_v2  ;;  %v1181_v58 = vpop.f32.mrf.mxu2 }
 0x16f   : > { %v1223_v50 = vadd.f32 %v1181_v58, %v1054_v56 }
 0x170   : > { %v1486_v43 = vadd.f32 %v1485_v22, %v1471_v38  ;;  %v960_v22 = vadd.f32 %v2861_v27, %v2859_v54 }
 0x171   : > { %v1015_v6 = vpop.f32.mrf.mxu1  ;;  %v1279_v47 = vpop.f32.mrf.mxu3 }
 0x172   : > { %v1321_v57 = vadd.f32 %v1279_v47, %v1223_v50  ;;  %v1055_v11 = vadd.f32 %v1015_v6, %v957_v60 }
 0x173   : > { %v1377_v49 = vpop.f32.mrf.mxu0 }
 0x174   : > { %v1419_v19 = vadd.f32 %v1377_v49, %v1321_v57 }
 0x176   : > { %1435 = vst [vmem:[%s2939_s13 + $0x18] sm:$0xff] %v1419_v19  ;;  %v1450_v39 = vadd.f32 %v1449_v24, %v1419_v19  ;;  %v1472_v5 = vmul.f32 %v1419_v19, %v1419_v19  ;;  %v1184_v41 = vpop.f32.mrf.mxu2 }
 0x177   : > { %v1224_v10 = vadd.f32 %v1184_v41, %v1055_v11 }
 0x178   : > { %v1487_v33 = vadd.f32 %v1486_v43, %v1472_v5 }
 0x179   : > { %v1018_v26 = vpop.f32.mrf.mxu1  ;;  %v1282_v53 = vpop.f32.mrf.mxu3 }
 0x17a   : > { %v1322_v51 = vadd.f32 %v1282_v53, %v1224_v10  ;;  %v1056_v44 = vadd.f32 %v1018_v26, %v958_v13 }
 0x17b   : > { %v1380_v36 = vpop.f32.mrf.mxu0 }
 0x17c   : > { %v1420_v16 = vadd.f32 %v1380_v36, %v1322_v51 }
 0x17e   : > { %1436 = vst [vmem:[%s2939_s13 + $0x20] sm:$0xff] %v1420_v16  ;;  %v1451_v29 = vadd.f32 %v1450_v39, %v1420_v16  ;;  %v1473_v42 = vmul.f32 %v1420_v16, %v1420_v16  ;;  %v1187_v17 = vpop.f32.mrf.mxu2 }
 0x17f   : > { %v1225_v34 = vadd.f32 %v1187_v17, %v1056_v44 }
 0x180   : > { %v1488_v31 = vadd.f32 %v1487_v33, %v1473_v42 }
 0x181   : > { %v1021_v7 = vpop.f32.mrf.mxu1  ;;  %v1285_v52 = vpop.f32.mrf.mxu3 }
 0x182   : > { %v1323_v0 = vadd.f32 %v1285_v52, %v1225_v34  ;;  %v1057_v20 = vadd.f32 %v1021_v7, %v959_v12 }
 0x183   : > { %v1383_v30 = vpop.f32.mrf.mxu0 }
 0x184   : > { %v1421_v37 = vadd.f32 %v1383_v30, %v1323_v0 }
 0x186   : > { %1437 = vst [vmem:[%s2939_s13 + $0x28] sm:$0xff] %v1421_v37  ;;  %v1452_v48 = vadd.f32 %v1451_v29, %v1421_v37  ;;  %v1474_v55 = vmul.f32 %v1421_v37, %v1421_v37  ;;  %v1190_v28 = vpop.f32.mrf.mxu2 }
 0x187   : > { %v1226_v18 = vadd.f32 %v1190_v28, %v1057_v20 }
 0x188   : > { %v1489_v15 = vadd.f32 %v1488_v31, %v1474_v55 }
 0x189   : > { %v1024_v4 = vpop.f32.mrf.mxu1  ;;  %v1288_v61 = vpop.f32.mrf.mxu3 }
 0x18a   : > { %v1324_v25 = vadd.f32 %v1288_v61, %v1226_v18  ;;  %v1058_v32 = vadd.f32 %v1024_v4, %v960_v22 }
 0x18b   : > { %v1386_v45 = vpop.f32.mrf.mxu0 }
 0x18c   : > { %v1422_v63 = vadd.f32 %v1386_v45, %v1324_v25 }
 0x18e   : > { %1438 = vst [vmem:[%s2939_s13 + $0x30] sm:$0xff] %v1422_v63  ;;  %v1453_v62 = vadd.f32 %v1452_v48, %v1422_v63  ;;  %v1475_v46 = vmul.f32 %v1422_v63, %v1422_v63  ;;  %v1193_v21 = vpop.f32.mrf.mxu2 }
 0x18f   : > { %v1227_v8 = vadd.f32 %v1193_v21, %v1058_v32 }
 0x190   : > { %v1490_v2 = vadd.f32 %v1489_v15, %v1475_v46 }
 0x191   : > { %v1027_v56 = vpop.f32.mrf.mxu1  ;;  %v1291_v24 = vpop.f32.mrf.mxu3 }
 0x192   : > { %v1325_v38 = vadd.f32 %v1291_v24, %v1227_v8  ;;  %v1059_v43 = vadd.f32 %v1027_v56, %v2869_v35 }
 0x193   : > { %v1389_v58 = vpop.f32.mrf.mxu0 }
 0x194   : > { %v1423_v50 = vadd.f32 %v1389_v58, %v1325_v38 }
 0x196   : > { %1439 = vst [vmem:[%s2939_s13 + $0x38] sm:$0xff] %v1423_v50  ;;  %v1454_v54 = vadd.f32 %v1453_v62, %v1423_v50  ;;  %v1476_v27 = vmul.f32 %v1423_v50, %v1423_v50  ;;  %v1196_v6 = vpop.f32.mrf.mxu2 }
 0x197   : > { %v1228_v47 = vadd.f32 %v1196_v6, %v1059_v43 }
 0x198   : > { %v1491_v57 = vadd.f32 %v1490_v2, %v1476_v27 }
 0x199   : > { %v1030_v60 = vpop.f32.mrf.mxu1  ;;  %v1294_v49 = vpop.f32.mrf.mxu3 }
 0x19a   : > { %v1326_v19 = vadd.f32 %v1294_v49, %v1228_v47  ;;  %v1060_v5 = vadd.f32 %v1030_v60, %v2882_v9 }
 0x19b   : > { %v1392_v11 = vpop.f32.mrf.mxu0 }
 0x19c   : > { %v1424_v39 = vadd.f32 %v1392_v11, %v1326_v19 }
 0x19e   : > { %1440 = vst [vmem:[%s2939_s13 + $0x40] sm:$0xff] %v1424_v39  ;;  %v1455_v41 = vadd.f32 %v1454_v54, %v1424_v39  ;;  %v1477_v10 = vmul.f32 %v1424_v39, %v1424_v39  ;;  %v1199_v33 = vpop.f32.mrf.mxu2 }
 0x19f   : > { %v1229_v26 = vadd.f32 %v1199_v33, %v1060_v5 }
 0x1a0   : > { %v1492_v35 = vadd.f32 %v1491_v57, %v1477_v10 }
 0x1a1   : > { %v1033_v53 = vpop.f32.mrf.mxu1  ;;  %v1297_v51 = vpop.f32.mrf.mxu3 }
 0x1a2   : > { %v1327_v13 = vadd.f32 %v1297_v51, %v1229_v26  ;;  %v1061_v44 = vadd.f32 %v1033_v53, %v2891_v40 }
 0x1a3   : > { %v1395_v36 = vpop.f32.mrf.mxu0 }
 0x1a4   : > { %v1425_v16 = vadd.f32 %v1395_v36, %v1327_v13 }
 0x1a6   : > { %1441 = vst [vmem:[%s2939_s13 + $0x48] sm:$0xff] %v1425_v16  ;;  %v1456_v29 = vadd.f32 %v1455_v41, %v1425_v16  ;;  %v1478_v42 = vmul.f32 %v1425_v16, %v1425_v16  ;;  %v1202_v17 = vpop.f32.mrf.mxu2 }
 0x1a7   : > { %v1230_v34 = vadd.f32 %v1202_v17, %v1061_v44 }
 0x1a8   : > { %v1493_v9 = vadd.f32 %v1492_v35, %v1478_v42 }
 0x1a9   : > { %v1036_v31 = vpop.f32.mrf.mxu1  ;;  %v1300_v7 = vpop.f32.mrf.mxu3 }
 0x1aa   : > { %v1328_v52 = vadd.f32 %v1300_v7, %v1230_v34  ;;  %v1062_v30 = vadd.f32 %v1036_v31, %v2900_v3 }
 0x1ab   : > { %v1398_v0 = vpop.f32.mrf.mxu0 }
 0x1ac   : > { %v1426_v12 = vadd.f32 %v1398_v0, %v1328_v52 }
 0x1ae   : > { %1442 = vst [vmem:[%s2939_s13 + $0x50] sm:$0xff] %v1426_v12  ;;  %v1457_v37 = vadd.f32 %v1456_v29, %v1426_v12  ;;  %v1479_v20 = vmul.f32 %v1426_v12, %v1426_v12  ;;  %v1205_v48 = vpop.f32.mrf.mxu2 }
 0x1af   : > { %v1231_v55 = vadd.f32 %v1205_v48, %v1062_v30 }
 0x1b0   : > { %v1494_v40 = vadd.f32 %v1493_v9, %v1479_v20 }
 0x1b1   : > { %v1039_v28 = vpop.f32.mrf.mxu1  ;;  %v1303_v18 = vpop.f32.mrf.mxu3 }
 0x1b2   : > { %v1329_v15 = vadd.f32 %v1303_v18, %v1231_v55  ;;  %v1063_v25 = vadd.f32 %v1039_v28, %v2907_v59 }
 0x1b3   : > { %v1401_v4 = vpop.f32.mrf.mxu0 }
 0x1b4   : > { %v1427_v61 = vadd.f32 %v1401_v4, %v1329_v15 }
 0x1b6   : > { %1443 = vst [vmem:[%s2939_s13 + $0x58] sm:$0xff] %v1427_v61  ;;  %v1458_v22 = vadd.f32 %v1457_v37, %v1427_v61  ;;  %v1480_v45 = vmul.f32 %v1427_v61, %v1427_v61  ;;  %v1208_v63 = vpop.f32.mrf.mxu2 }
 0x1b7   : > { %v1232_v32 = vadd.f32 %v1208_v63, %v1063_v25 }
 0x1b8   : > { %v1495_v3 = vadd.f32 %v1494_v40, %v1480_v45 }
 0x1b9   : > { %v1042_v62 = vpop.f32.mrf.mxu1  ;;  %v1306_v46 = vpop.f32.mrf.mxu3 }
 0x1ba   : > { %v1330_v21 = vadd.f32 %v1306_v46, %v1232_v32  ;;  %v1064_v56 = vadd.f32 %v1042_v62, %v2914_v14 }
 0x1bb   : > { %v1404_v8 = vpop.f32.mrf.mxu0 }
 0x1bc   : > { %v1428_v2 = vadd.f32 %v1404_v8, %v1330_v21 }
 0x1be   : > { %1444 = vst [vmem:[%s2939_s13 + $0x60] sm:$0xff] %v1428_v2  ;;  %v1459_v24 = vadd.f32 %v1458_v22, %v1428_v2  ;;  %v1481_v38 = vmul.f32 %v1428_v2, %v1428_v2  ;;  %v1211_v58 = vpop.f32.mrf.mxu2 }
 0x1bf   : > { %v1233_v50 = vadd.f32 %v1211_v58, %v1064_v56 }
 0x1c0   : > { %v1496_v59 = vadd.f32 %v1495_v3, %v1481_v38 }
 0x1c1   : > { %v1045_v43 = vpop.f32.mrf.mxu1  ;;  %v1309_v54 = vpop.f32.mrf.mxu3 }
 0x1c2   : > { %v1331_v27 = vadd.f32 %v1309_v54, %v1233_v50  ;;  %v1065_v57 = vadd.f32 %v1045_v43, %v2922_v23 }
 0x1c3   : > { %v1407_v6 = vpop.f32.mrf.mxu0 }
 0x1c4   : > { %v1429_v47 = vadd.f32 %v1407_v6, %v1331_v27 }
 0x1c6   : > { %1445 = vst [vmem:[%s2939_s13 + $0x68] sm:$0xff] %v1429_v47  ;;  %v1460_v60 = vadd.f32 %v1459_v24, %v1429_v47  ;;  %v1482_v49 = vmul.f32 %v1429_v47, %v1429_v47  ;;  %v1214_v19 = vpop.f32.mrf.mxu2 }
 0x1c7   : > { %v1234_v11 = vadd.f32 %v1214_v19, %v1065_v57 }
 0x1c8   : > { %v1497_v14 = vadd.f32 %v1496_v59, %v1482_v49 }
 0x1c9   : > { %v1312_v39 = vpop.f32.mrf.mxu3  ;;  %v1048_v5 = vpop.f32.mrf.mxu1 }
 0x1ca   : > { %v1332_v41 = vadd.f32 %v1312_v39, %v1234_v11  ;;  %v1066_v26 = vadd.f32 %v1048_v5, %v2932_v1 }
 0x1cb   : > { %v1410_v10 = vpop.f32.mrf.mxu0 }
 0x1cc   : > { %v1430_v33 = vadd.f32 %v1410_v10, %v1332_v41 }
 0x1ce   : > { %1446 = vst [vmem:[%s2939_s13 + $0x70] sm:$0xff] %v1430_v33  ;;  %v1461_v35 = vadd.f32 %v1460_v60, %v1430_v33  ;;  %v1483_v53 = vmul.f32 %v1430_v33, %v1430_v33  ;;  %v1217_v23 = vpop.f32.mrf.mxu2 }
 0x1cf   : > { %v1235_v51 = vadd.f32 %v1217_v23, %v1066_v26 }
 0x1d0   : > { %v1498_v13 = vadd.f32 %v1497_v14, %v1483_v53 }
 0x1d1   : > { %v1315_v36 = vpop.f32.mrf.mxu3 }
 0x1d2   : > { %v1333_v16 = vadd.f32 %v1315_v36, %v1235_v51 }
 0x1d3   : > { %v1413_v44 = vpop.f32.mrf.mxu0 }
 0x1d4   : > { %v1431_v29 = vadd.f32 %v1413_v44, %v1333_v16 }
 0x1d6   : > { %1447 = vst [vmem:[%s2939_s13 + $0x78] sm:$0xff] %v1431_v29  ;;  %v1462_v42 = vadd.f32 %v1461_v35, %v1431_v29  ;;  %v1484_v17 = vmul.f32 %v1431_v29, %v1431_v29 }
 0x1d8   : > { %v1463_v34 = vrot.slane %v1462_v42, 4  ;;  %v1499_v9 = vadd.f32 %v1498_v13, %v1484_v17 }
 0x1da   : > { %v1464_v1 = vadd.f32 %v1463_v34, %v1462_v42  ;;  %v1500_v31 = vrot.slane %v1499_v9, 4 }
 0x1dc   : > { %v1465_v7 = vrot.slane %v1464_v1, 2  ;;  %v1501_v52 = vadd.f32 %v1500_v31, %v1499_v9 }
 0x1de   : > { %v1466_v0 = vadd.f32 %v1465_v7, %v1464_v1  ;;  %v1502_v12 = vrot.slane %v1501_v52, 2 }
 0x1e0   : > { %v1467_v30 = vrot.slane %v1466_v0, 1  ;;  %v1503_v37 = vadd.f32 %v1502_v12, %v1501_v52 }
 0x1e2   : > { %v1504_v20 = vrot.slane %v1503_v37, 1  ;;  %v1468_v48 = vadd.f32 %v1467_v30, %v1466_v0 }
 0x1e4   : > { %v1505_v55 = vadd.f32 %v1504_v20, %v1503_v37 }
 0x1e6   : > { %v1507_v40 = vsel %vm1506_vm2, %v1468_v48, %v1505_v55 }
 0x1e7   : > { %1508 = vst [vmem:[%s380_s25] sm:$0x3] %v1507_v40 }
 0x1e8 PF: > { %s15_s19 = sadd.s32 1, %s2005_s19   ;;  %s3008_s15 = smov %s1997_s17 }
 0x1e9   : > { %p12_p10 = scmp.ge.s32.totalorder %s15_s19, 6   ;;  %s3009_s16 = smov %s2001_s18 }
 0x1ea   : > { %s3010_s17 = smov %s3013_s20  ;;  %s3011_s18 = smov %s3017_s21 }
 0x1eb   :  { %14 = sbr.rel (!%p12_p10) target bundleno = 3 (0x3), region = 88 }

</bundles_post_ra>
